<compile_context>
chip_gen: v7x
topology: tpu7x:2x2x1
jax: 0.10.0
libtpu: 0.0.40
codegen_flags: <defaults>
</compile_context>

<pallas_src>
import functools

import jax
import jax.numpy as jnp
from jax.experimental import pallas as pl
from jax.experimental.pallas import tpu as pltpu

EPS = 1e-6
NEG_INF = -1e9


# ---------------------------------------------------------------------------
# In-kernel helpers
# ---------------------------------------------------------------------------
def _layernorm(x2d, gamma, beta):
    # torch: mean(-1), std(-1) with Bessel correction, eps added to std.
    d = x2d.shape[-1]
    mean = jnp.mean(x2d, axis=-1, keepdims=True)
    cen = x2d - mean
    var = jnp.sum(cen * cen, axis=-1, keepdims=True) * (1.0 / (d - 1))
    inv = pl.reciprocal(jnp.sqrt(var) + EPS, approx=False)
    return gamma * (cen * inv) + beta


# ---------------------------------------------------------------------------
# Fused stack kernel: grid = (batch_tiles, n_layers), layers innermost.
# ---------------------------------------------------------------------------
def _stack_kernel(n_heads, q_chunk, ff_chunk,
                  x_ref, mask_ref,
                  wqkv_ref, bqkv_ref, wo_ref, bo_ref,
                  w1_ref, b1_ref, w2_ref, b2_ref,
                  g1_ref, be1_ref, g2_ref, be2_ref,
                  ng_ref, nb_ref,
                  o_ref,
                  x_sc, ctx_sc, mb_sc):
    l = pl.program_id(1)
    n_layers = pl.num_programs(1)

    Bt, S, D = x_sc.shape
    dk = D // n_heads
    d_ff = w1_ref.shape[-1]
    M = Bt * S
    scale = jnp.float32(1.0 / (dk ** 0.5))
    bf16, f32 = jnp.bfloat16, jnp.float32

    # Per batch tile: load activation into resident VMEM scratch and hoist the mask bias
    # (0 keep / -1e9 masked) out of the layer loop.
    @pl.when(l == 0)
    def _():
        x_sc[...] = x_ref[...].astype(f32)
        mb_sc[...] = jnp.where(mask_ref[...] > 0.0, 0.0, NEG_INF).astype(f32)

    x = x_sc[...].reshape(M, D)                                       # (M, D) f32
    mbias = mb_sc[...]                                                # (Bt, 1, S) f32

    # ---- sublayer 1: pre-norm multi-head self-attention + residual ----------
    xn = _layernorm(x, g1_ref[0], be1_ref[0])
    qkv = jnp.dot(xn.astype(bf16), wqkv_ref[0],
                  preferred_element_type=f32) + bqkv_ref[0]           # (M, 3D) f32
    q = (qkv[:, :D] * scale).reshape(Bt, S, D).astype(bf16)           # scale folded in
    k = qkv[:, D:2 * D].reshape(Bt, S, D).astype(bf16)
    v = qkv[:, 2 * D:].reshape(Bt, S, D).astype(bf16)

    # Per-head attention; context written into a (Bt, S, D) bf16 slab so the output
    # projection is ONE big K=D matmul instead of n_heads K=dk matmuls.
    n_q = S // q_chunk
    for h in range(n_heads):                                          # static unroll
        sl = slice(h * dk, (h + 1) * dk)
        kh = k[:, :, sl]
        vh = v[:, :, sl]
        for qi in range(n_q):                                         # flash-style q tiles
            qs = slice(qi * q_chunk, (qi + 1) * q_chunk)
            s = jnp.einsum('bqd,bkd->bqk', q[:, qs, sl], kh,
                           preferred_element_type=f32)                # (Bt, Sq, S)
            s = s + mbias
            s = s - jnp.max(s, axis=-1, keepdims=True)
            p = jnp.exp(s)
            attn = p * pl.reciprocal(jnp.sum(p, axis=-1, keepdims=True), approx=True)
            ctx = jnp.einsum('bqk,bkd->bqd', attn.astype(bf16), vh,
                             preferred_element_type=f32)              # (Bt, Sq, dk)
            ctx_sc[:, qs, sl] = ctx.astype(bf16)

    attn_out = jnp.dot(ctx_sc[...].reshape(M, D), wo_ref[0],
                       preferred_element_type=f32)                    # (M, D) f32
    x = x + attn_out + bo_ref[0]

    # ---- sublayer 2: pre-norm feed-forward + residual ------------------------
    xn2 = _layernorm(x, g2_ref[0], be2_ref[0]).astype(bf16)
    n_ff = d_ff // ff_chunk
    ff = None
    for ci in range(n_ff):                                            # static unroll
        cs = slice(ci * ff_chunk, (ci + 1) * ff_chunk)
        hdn = jnp.maximum(
            jnp.dot(xn2, w1_ref[0][:, cs], preferred_element_type=f32) + b1_ref[0][:, cs],
            0.0).astype(bf16)                                         # bf16 hidden tile
        part = jnp.dot(hdn, w2_ref[0][cs, :], preferred_element_type=f32)
        ff = part if ff is None else ff + part
    x = x + ff + b2_ref[0]

    x_sc[...] = x.reshape(Bt, S, D)

    # ---- epilogue: fold the stack's final LayerNorm into the last layer ------
    @pl.when(l == n_layers - 1)
    def _():
        out = _layernorm(x, ng_ref[...], nb_ref[...])
        o_ref[...] = out.reshape(Bt, S, D).astype(o_ref.dtype)


# ---------------------------------------------------------------------------
# Wrapper: one pallas_call for the whole stack + final norm.
# ---------------------------------------------------------------------------
def transformer_stack(x, mask, params, n_heads,
                      block_b=None, q_chunk=None, ff_chunk=None):
    B, S, D = x.shape
    L = params['wqkv'].shape[0]
    d_ff = params['w1'].shape[-1]

    assert D % n_heads == 0, "d_model must be divisible by n_heads"
    if block_b is None:
        # >= 2 batch tiles when possible so the 'parallel' axis can be split across
        # v7x's two TensorCores; a single tile otherwise.
        block_b = B // 2 if (B % 2 == 0 and B >= 2) else B
    assert B % block_b == 0
    if q_chunk is None:
        q_chunk = 256 if (S > 512 and S % 256 == 0) else S
    assert S % q_chunk == 0
    if ff_chunk is None:
        ff_chunk = 2048 if (d_ff > 2048 and d_ff % 2048 == 0) else d_ff
    assert d_ff % ff_chunk == 0
    # Note: S % 8 == 0 and dk % 128 == 0 keep the reshapes/lane-slices free views on
    # real configs; off-spec shapes still run but may incur hidden repack copies.

    bf16 = jnp.bfloat16
    wqkv = params['wqkv'].astype(bf16)
    wo = params['wo'].astype(bf16)
    w1 = params['w1'].astype(bf16)
    w2 = params['w2'].astype(bf16)

    def lspec(a):  # layer-stacked (L, ..., ...) weight, indexed by the layer axis
        return pl.BlockSpec((1,) + a.shape[1:], lambda b, l: (l, 0, 0))

    in_specs = [
        pl.BlockSpec((block_b, S, D), lambda b, l: (b, 0, 0)),   # x
        pl.BlockSpec((block_b, 1, S), lambda b, l: (b, 0, 0)),   # mask
        lspec(wqkv), lspec(params['bqkv']),
        lspec(wo), lspec(params['bo']),
        lspec(w1), lspec(params['b1']),
        lspec(w2), lspec(params['b2']),
        lspec(params['g1']), lspec(params['be1']),
        lspec(params['g2']), lspec(params['be2']),
        pl.BlockSpec((1, D), lambda b, l: (0, 0)),               # final-norm gamma
        pl.BlockSpec((1, D), lambda b, l: (0, 0)),               # final-norm beta
    ]

    # ---- explicit scoped-VMEM budget (defaults are 16/32 MiB — too small at scale) ----
    M = block_b * S
    weight_bytes = (D * 3 * D + D * D + D * d_ff + d_ff * D) * 2 \
        + (3 * D + D + d_ff + D + 4 * D) * 4                     # bf16 weights + f32 biases/LN
    act_block = block_b * S * D
    est = (act_block * 4                      # x_sc (f32, resident)
           + act_block * 2                    # ctx_sc (bf16, resident)
           + block_b * S * 4                  # mask-bias scratch
           + 2 * 2 * act_block * 4            # double-buffered x + out blocks
           + 2 * block_b * S * 4              # double-buffered mask block
           + 2 * weight_bytes                 # double-buffered per-layer weights
           + M * 3 * D * 4 + 3 * M * D * 2    # qkv f32 + q/k/v bf16
           + 2 * block_b * q_chunk * S * 4    # score tile + exp
           + 2 * M * D * 4                    # xn / attn_out f32
           + M * ff_chunk * 6 + M * D * 4)    # FFN chunk intermediates + ff accumulator
    vmem_limit = int(min(max(est * 3 // 2, 32 * 2**20), 64 * 2**20))

    # ---- advisory cost estimate for the XLA scheduler --------------------------------
    flops = L * (2 * B * S * (3 * D * D + D * D + 2 * D * d_ff) + 4 * B * S * S * D) \
        + 2 * B * S * D
    transcendentals = L * B * n_heads * S * S
    bytes_accessed = 2 * B * S * D * 4 + B * S * 4 + (B // block_b) * L * weight_bytes
    cost = pl.CostEstimate(flops=flops, transcendentals=transcendentals,
                           bytes_accessed=bytes_accessed)

    kernel = functools.partial(_stack_kernel, n_heads, q_chunk, ff_chunk)

    return pl.pallas_call(
        kernel,
        out_shape=jax.ShapeDtypeStruct((B, S, D), x.dtype),
        grid=(B // block_b, L),
        in_specs=in_specs,
        out_specs=pl.BlockSpec((block_b, S, D), lambda b, l: (b, 0, 0)),
        scratch_shapes=[pltpu.VMEM((block_b, S, D), jnp.float32),     # resident activation
                        pltpu.VMEM((block_b, S, D), jnp.bfloat16),    # per-head context slab
                        pltpu.VMEM((block_b, 1, S), jnp.float32)],    # hoisted mask bias
        compiler_params=pltpu.CompilerParams(
            dimension_semantics=("parallel", "arbitrary"),
            vmem_limit_bytes=vmem_limit),
        cost_estimate=cost,
    )(x, mask,
      wqkv, params['bqkv'], wo, params['bo'],
      w1, params['b1'], w2, params['b2'],
      params['g1'], params['be1'], params['g2'], params['be2'],
      params['ng'], params['nb'])


# ---------------------------------------------------------------------------
# Pure-JAX reference (same math / same bf16 cast points) for validation
# ---------------------------------------------------------------------------
def ref_forward(x, mask, params, n_heads):
    B, S, D = x.shape
    dk = D // n_heads
    L = params['wqkv'].shape[0]
    bf16, f32 = jnp.bfloat16, jnp.float32
    scale = 1.0 / (dk ** 0.5)

    def ln(x2, g, b):
        d = x2.shape[-1]
        mean = x2.mean(-1, keepdims=True)
        cen = x2 - mean
        var = (cen * cen).sum(-1, keepdims=True) / (d - 1)
        return g * cen / (jnp.sqrt(var) + EPS) + b

    mbias = jnp.where(mask > 0.0, 0.0, NEG_INF).astype(f32)             # (B, 1, S)
    x2 = x.astype(f32).reshape(B * S, D)
    for li in range(L):
        xn = ln(x2, params['g1'][li], params['be1'][li])
        qkv = jnp.dot(xn.astype(bf16), params['wqkv'][li].astype(bf16),
                      preferred_element_type=f32) + params['bqkv'][li]
        q = (qkv[:, :D] * scale).reshape(B, S, D).astype(bf16)
        k = qkv[:, D:2 * D].reshape(B, S, D).astype(bf16)
        v = qkv[:, 2 * D:].reshape(B, S, D).astype(bf16)
        ctx_all = []
        for h in range(n_heads):
            sl = slice(h * dk, (h + 1) * dk)
            s = jnp.einsum('bqd,bkd->bqk', q[:, :, sl], k[:, :, sl],
                           preferred_element_type=f32) + mbias
            s = s - s.max(-1, keepdims=True)
            p = jnp.exp(s)
            attn = p / p.sum(-1, keepdims=True)
            ctx = jnp.einsum('bqk,bkd->bqd', attn.astype(bf16), v[:, :, sl],
                             preferred_element_type=f32)
            ctx_all.append(ctx.astype(bf16))
        ctx_cat = jnp.concatenate(ctx_all, axis=-1).reshape(B * S, D)
        attn_out = jnp.dot(ctx_cat, params['wo'][li].astype(bf16),
                           preferred_element_type=f32)
        x2 = x2 + attn_out + params['bo'][li]
        xn2 = ln(x2, params['g2'][li], params['be2'][li])
        hdn = jnp.maximum(jnp.dot(xn2.astype(bf16), params['w1'][li].astype(bf16),
                                  preferred_element_type=f32) + params['b1'][li], 0.0)
        x2 = x2 + jnp.dot(hdn.astype(bf16), params['w2'][li].astype(bf16),
                          preferred_element_type=f32) + params['b2'][li]
    return ln(x2, params['ng'], params['nb']).reshape(B, S, D)


# ---------------------------------------------------------------------------
# Parameter init (deterministic, synthetic), layer-stacked along leading L axis
# ---------------------------------------------------------------------------
def init_params(key, n_blocks, d_model, d_ff):
    wqkv, wo, w1, w2 = [], [], [], []
    for _ in range(n_blocks):
        key, k1, k2, k3, k4, k5, k6 = jax.random.split(key, 7)
        wq = jax.random.normal(k1, (d_model, d_model), jnp.float32) * 0.1
        wk = jax.random.normal(k2, (d_model, d_model), jnp.float32) * 0.1
        wv = jax.random.normal(k3, (d_model, d_model), jnp.float32) * 0.1
        wqkv.append(jnp.concatenate([wq, wk, wv], axis=1))              # (D, 3D)
        wo.append(jax.random.normal(k4, (d_model, d_model), jnp.float32) * 0.1)
        w1.append(jax.random.normal(k5, (d_model, d_ff), jnp.float32) * 0.1)
        w2.append(jax.random.normal(k6, (d_ff, d_model), jnp.float32) * 0.1)
    L = n_blocks
    return {
        'wqkv': jnp.stack(wqkv),                                  # (L, D, 3D)
        'bqkv': jnp.zeros((L, 1, 3 * d_model), jnp.float32),
        'wo': jnp.stack(wo),                                      # (L, D, D)
        'bo': jnp.full((L, 1, d_model), 0.01, jnp.float32),
        'w1': jnp.stack(w1),                                      # (L, D, DFF)
        'b1': jnp.full((L, 1, d_ff), 0.01, jnp.float32),
        'w2': jnp.stack(w2),                                      # (L, DFF, D)
        'b2': jnp.full((L, 1, d_model), 0.01, jnp.float32),
        'g1': jnp.ones((L, 1, d_model), jnp.float32),
        'be1': jnp.zeros((L, 1, d_model), jnp.float32),
        'g2': jnp.ones((L, 1, d_model), jnp.float32),
        'be2': jnp.zeros((L, 1, d_model), jnp.float32),
        'ng': jnp.ones((1, d_model), jnp.float32),
        'nb': jnp.zeros((1, d_model), jnp.float32),
    }


if __name__ == "__main__":
    B, S, D, H, DFF, NBLOCKS = 2, 8, 32, 4, 64, 2

    key = jax.random.PRNGKey(0)
    kx, kp = jax.random.split(key)
    x = jax.random.normal(kx, (B, S, D), jnp.float32)

    # mask: first batch attends to all 8 positions, second only to the first 5.
    lengths = jnp.array([8, 5])
    mask = (jnp.arange(S)[None, :] < lengths[:, None]).astype(jnp.float32)[:, None, :]

    params = init_params(kp, NBLOCKS, D, DFF)

    out = transformer_stack(x, mask, params, H)
    out = jax.block_until_ready(out)

    ref = ref_forward(x, mask, params, H)
    assert out.shape == (B, S, D)
    max_err = jnp.max(jnp.abs(out - ref))
    assert jnp.allclose(out, ref, rtol=2e-2, atol=2e-2), f"max abs err = {max_err}"

    print("KERNEL_OK")
</pallas_src>

<mosaic_0001>
module attributes {stable_mosaic.version = 11 : i64} {
  func.func @_stack_kernel(%arg0: i32, %arg1: i32, %arg2: memref<1x8x32xf32, #tpu.memory_space<vmem>>, %arg3: memref<1x1x8xf32, #tpu.memory_space<vmem>>, %arg4: memref<1x32x96xbf16, #tpu.memory_space<vmem>>, %arg5: memref<1x1x96xf32, #tpu.memory_space<vmem>>, %arg6: memref<1x32x32xbf16, #tpu.memory_space<vmem>>, %arg7: memref<1x1x32xf32, #tpu.memory_space<vmem>>, %arg8: memref<1x32x64xbf16, #tpu.memory_space<vmem>>, %arg9: memref<1x1x64xf32, #tpu.memory_space<vmem>>, %arg10: memref<1x64x32xbf16, #tpu.memory_space<vmem>>, %arg11: memref<1x1x32xf32, #tpu.memory_space<vmem>>, %arg12: memref<1x1x32xf32, #tpu.memory_space<vmem>>, %arg13: memref<1x1x32xf32, #tpu.memory_space<vmem>>, %arg14: memref<1x1x32xf32, #tpu.memory_space<vmem>>, %arg15: memref<1x1x32xf32, #tpu.memory_space<vmem>>, %arg16: memref<1x32xf32, #tpu.memory_space<vmem>>, %arg17: memref<1x32xf32, #tpu.memory_space<vmem>>, %arg18: memref<1x8x32xf32, #tpu.memory_space<vmem>>, %arg19: memref<1x8x32xf32, #tpu.memory_space<vmem>>, %arg20: memref<1x8x32xbf16, #tpu.memory_space<vmem>>, %arg21: memref<1x1x8xf32, #tpu.memory_space<vmem>>) attributes {dimension_semantics = [#tpu.dimension_semantics<parallel>, #tpu.dimension_semantics<arbitrary>], iteration_bounds = array<i64: 2, 2>, scalar_prefetch = 0 : i64, scratch_operands = 3 : i64, tpu.core_type = #tpu.core_type<tc>, window_params = [{transform_indices = @transform_0, window_bounds = array<i64: 1, 8, 32>}, {transform_indices = @transform_1, window_bounds = array<i64: 1, 1, 8>}, {transform_indices = @transform_2, window_bounds = array<i64: 1, 32, 96>}, {transform_indices = @transform_3, window_bounds = array<i64: 1, 1, 96>}, {transform_indices = @transform_4, window_bounds = array<i64: 1, 32, 32>}, {transform_indices = @transform_5, window_bounds = array<i64: 1, 1, 32>}, {transform_indices = @transform_6, window_bounds = array<i64: 1, 32, 64>}, {transform_indices = @transform_7, window_bounds = array<i64: 1, 1, 64>}, {transform_indices = @transform_8, window_bounds = array<i64: 1, 64, 32>}, {transform_indices = @transform_9, window_bounds = array<i64: 1, 1, 32>}, {transform_indices = @transform_10, window_bounds = array<i64: 1, 1, 32>}, {transform_indices = @transform_11, window_bounds = array<i64: 1, 1, 32>}, {transform_indices = @transform_12, window_bounds = array<i64: 1, 1, 32>}, {transform_indices = @transform_13, window_bounds = array<i64: 1, 1, 32>}, {pipeline_mode = #tpu.pipeline_mode<synchronous>, transform_indices = @transform_14, window_bounds = array<i64: 1, 32>}, {pipeline_mode = #tpu.pipeline_mode<synchronous>, transform_indices = @transform_15, window_bounds = array<i64: 1, 32>}, {transform_indices = @transform_16, window_bounds = array<i64: 1, 8, 32>}]} {
    %c0_i32 = arith.constant 0 : i32
    %0 = arith.cmpi eq, %arg1, %c0_i32 : i32
    %1 = arith.extui %0 : i1 to i32
    %c0_i32_0 = arith.constant 0 : i32
    %2 = arith.cmpi ne, %1, %c0_i32_0 : i32
    scf.if %2 {
      %c0_89 = arith.constant 0 : index
      %c0_90 = arith.constant 0 : index
      %c0_91 = arith.constant 0 : index
      %189 = vector.load %arg2[%c0_89, %c0_90, %c0_91] : memref<1x8x32xf32, #tpu.memory_space<vmem>>, vector<1x8x32xf32>
      %c0_92 = arith.constant 0 : index
      %c0_93 = arith.constant 0 : index
      %c0_94 = arith.constant 0 : index
      %190 = vector.load %arg19[%c0_92, %c0_93, %c0_94] : memref<1x8x32xf32, #tpu.memory_space<vmem>>, vector<1x8x32xf32>
      tpu.vector_store %arg19[%c0_92, %c0_93, %c0_94], %189 {strides = array<i32>} : memref<1x8x32xf32, #tpu.memory_space<vmem>>, vector<1x8x32xf32>,
      %c0_95 = arith.constant 0 : index
      %c0_96 = arith.constant 0 : index
      %c0_97 = arith.constant 0 : index
      %191 = vector.load %arg3[%c0_95, %c0_96, %c0_97] : memref<1x1x8xf32, #tpu.memory_space<vmem>>, vector<1x1x8xf32>
      %cst_98 = arith.constant 0.000000e+00 : f32
      %192 = vector.broadcast %cst_98 : f32 to vector<1x1x8xf32>
      %193 = arith.cmpf ogt, %191, %192 : vector<1x1x8xf32>
      %cst_99 = arith.constant 0.000000e+00 : f32
      %cst_100 = arith.constant -1.000000e+09 : f32
      %194 = vector.broadcast %cst_99 : f32 to vector<1x1x8xf32>
      %195 = vector.broadcast %cst_100 : f32 to vector<1x1x8xf32>
      %196 = arith.select %193, %194, %195 : vector<1x1x8xi1>, vector<1x1x8xf32>
      %c0_101 = arith.constant 0 : index
      %c0_102 = arith.constant 0 : index
      %c0_103 = arith.constant 0 : index
      %197 = vector.load %arg21[%c0_101, %c0_102, %c0_103] : memref<1x1x8xf32, #tpu.memory_space<vmem>>, vector<1x1x8xf32>
      tpu.vector_store %arg21[%c0_101, %c0_102, %c0_103], %196 {strides = array<i32>} : memref<1x1x8xf32, #tpu.memory_space<vmem>>, vector<1x1x8xf32>,
    } else {
    }
    %c0 = arith.constant 0 : index
    %c0_1 = arith.constant 0 : index
    %c0_2 = arith.constant 0 : index
    %3 = vector.load %arg19[%c0, %c0_1, %c0_2] : memref<1x8x32xf32, #tpu.memory_space<vmem>>, vector<1x8x32xf32>
    %4 = vector.shape_cast %3 : vector<1x8x32xf32> to vector<8x32xf32>
    %c0_3 = arith.constant 0 : index
    %c0_4 = arith.constant 0 : index
    %c0_5 = arith.constant 0 : index
    %5 = vector.load %arg21[%c0_3, %c0_4, %c0_5] : memref<1x1x8xf32, #tpu.memory_space<vmem>>, vector<1x1x8xf32>
    %c0_6 = arith.constant 0 : index
    %c0_7 = arith.constant 0 : index
    %c0_8 = arith.constant 0 : index
    %6 = vector.load %arg12[%c0_6, %c0_7, %c0_8] : memref<1x1x32xf32, #tpu.memory_space<vmem>>, vector<1x1x32xf32>
    %7 = vector.shape_cast %6 : vector<1x1x32xf32> to vector<1x32xf32>
    %c0_9 = arith.constant 0 : index
    %c0_10 = arith.constant 0 : index
    %c0_11 = arith.constant 0 : index
    %8 = vector.load %arg13[%c0_9, %c0_10, %c0_11] : memref<1x1x32xf32, #tpu.memory_space<vmem>>, vector<1x1x32xf32>
    %9 = vector.shape_cast %8 : vector<1x1x32xf32> to vector<1x32xf32>
    %cst = arith.constant dense<0.000000e+00> : vector<8xf32>
    %10 = vector.multi_reduction <add>, %4, %cst [1] : vector<8x32xf32> to vector<8xf32>
    %11 = vector.shape_cast %10 : vector<8xf32> to vector<8x1xf32>
    %cst_12 = arith.constant 3.200000e+01 : f32
    %12 = vector.broadcast %cst_12 : f32 to vector<8x1xf32>
    %13 = arith.divf %11, %12 : vector<8x1xf32>
    %14 = vector.broadcast %13 : vector<8x1xf32> to vector<8x32xf32>
    %15 = arith.subf %4, %14 : vector<8x32xf32>
    %16 = arith.mulf %15, %15 : vector<8x32xf32>
    %cst_13 = arith.constant dense<0.000000e+00> : vector<8xf32>
    %17 = vector.multi_reduction <add>, %16, %cst_13 [1] : vector<8x32xf32> to vector<8xf32>
    %18 = vector.shape_cast %17 : vector<8xf32> to vector<8x1xf32>
    %cst_14 = arith.constant 0.0322580636 : f32
    %19 = vector.broadcast %cst_14 : f32 to vector<8x1xf32>
    %20 = arith.mulf %18, %19 : vector<8x1xf32>
    %21 = math.sqrt %20 : vector<8x1xf32>
    %cst_15 = arith.constant 9.99999997E-7 : f32
    %22 = vector.broadcast %cst_15 : f32 to vector<8x1xf32>
    %23 = arith.addf %21, %22 : vector<8x1xf32>
    %24 = tpu.reciprocal %23 : vector<8x1xf32> -> vector<8x1xf32>
    %25 = vector.broadcast %24 : vector<8x1xf32> to vector<8x32xf32>
    %26 = arith.mulf %15, %25 : vector<8x32xf32>
    %27 = vector.broadcast %7 : vector<1x32xf32> to vector<8x32xf32>
    %28 = arith.mulf %27, %26 : vector<8x32xf32>
    %29 = vector.broadcast %9 : vector<1x32xf32> to vector<8x32xf32>
    %30 = arith.addf %28, %29 : vector<8x32xf32>
    %31 = arith.truncf %30 : vector<8x32xf32> to vector<8x32xbf16>
    %c0_16 = arith.constant 0 : index
    %c0_17 = arith.constant 0 : index
    %c0_18 = arith.constant 0 : index
    %32 = vector.load %arg4[%c0_16, %c0_17, %c0_18] : memref<1x32x96xbf16, #tpu.memory_space<vmem>>, vector<1x32x96xbf16>
    %33 = vector.shape_cast %32 : vector<1x32x96xbf16> to vector<32x96xbf16>
    %cst_19 = arith.constant dense<0.000000e+00> : vector<8x96xf32>
    %34 = tpu.matmul %31, %33, %cst_19 {dimension_numbers = #tpu.dot_dimension_numbers<[1], [0], [0], [1], [0, 0, 1, 1], [], []>} : vector<8x32xbf16>, vector<32x96xbf16>, vector<8x96xf32> -> vector<8x96xf32>
    %c0_20 = arith.constant 0 : index
    %c0_21 = arith.constant 0 : index
    %c0_22 = arith.constant 0 : index
    %35 = vector.load %arg5[%c0_20, %c0_21, %c0_22] : memref<1x1x96xf32, #tpu.memory_space<vmem>>, vector<1x1x96xf32>
    %36 = vector.shape_cast %35 : vector<1x1x96xf32> to vector<1x96xf32>
    %37 = vector.broadcast %36 : vector<1x96xf32> to vector<8x96xf32>
    %38 = arith.addf %34, %37 : vector<8x96xf32>
    %39 = vector.extract_strided_slice %38 {offsets = [0, 0], sizes = [8, 32], strides = [1, 1]} : vector<8x96xf32> to vector<8x32xf32>
    %cst_23 = arith.constant 0.353553385 : f32
    %40 = vector.broadcast %cst_23 : f32 to vector<8x32xf32>
    %41 = arith.mulf %39, %40 : vector<8x32xf32>
    %42 = vector.shape_cast %41 : vector<8x32xf32> to vector<1x8x32xf32>
    %43 = arith.truncf %42 : vector<1x8x32xf32> to vector<1x8x32xbf16>
    %44 = vector.extract_strided_slice %38 {offsets = [0, 32], sizes = [8, 32], strides = [1, 1]} : vector<8x96xf32> to vector<8x32xf32>
    %45 = vector.shape_cast %44 : vector<8x32xf32> to vector<1x8x32xf32>
    %46 = arith.truncf %45 : vector<1x8x32xf32> to vector<1x8x32xbf16>
    %47 = vector.extract_strided_slice %38 {offsets = [0, 64], sizes = [8, 32], strides = [1, 1]} : vector<8x96xf32> to vector<8x32xf32>
    %48 = vector.shape_cast %47 : vector<8x32xf32> to vector<1x8x32xf32>
    %49 = arith.truncf %48 : vector<1x8x32xf32> to vector<1x8x32xbf16>
    %50 = vector.extract_strided_slice %46 {offsets = [0, 0, 0], sizes = [1, 8, 8], strides = [1, 1, 1]} : vector<1x8x32xbf16> to vector<1x8x8xbf16>
    %51 = vector.extract_strided_slice %49 {offsets = [0, 0, 0], sizes = [1, 8, 8], strides = [1, 1, 1]} : vector<1x8x32xbf16> to vector<1x8x8xbf16>
    %52 = vector.extract_strided_slice %43 {offsets = [0, 0, 0], sizes = [1, 8, 8], strides = [1, 1, 1]} : vector<1x8x32xbf16> to vector<1x8x8xbf16>
    "tpu.trace_start"() <{level = 10 : i32, message = "bqd,bkd->bqk"}> : () -> ()
    %cst_24 = arith.constant dense<0.000000e+00> : vector<1x8x8xf32>
    %53 = tpu.matmul %52, %50, %cst_24 {dimension_numbers = #tpu.dot_dimension_numbers<[2], [2], [1], [1], [0, 0, 0, 1, 1, 1], [0], [0]>} : vector<1x8x8xbf16>, vector<1x8x8xbf16>, vector<1x8x8xf32> -> vector<1x8x8xf32>
    "tpu.trace_stop"() : () -> ()
    %54 = vector.broadcast %5 : vector<1x1x8xf32> to vector<1x8x8xf32>
    %55 = arith.addf %53, %54 : vector<1x8x8xf32>
    %cst_25 = arith.constant dense<0xFF800000> : vector<1x8xf32>
    %56 = vector.multi_reduction <maximumf>, %55, %cst_25 [2] : vector<1x8x8xf32> to vector<1x8xf32>
    %57 = vector.shape_cast %56 : vector<1x8xf32> to vector<1x8x1xf32>
    %58 = vector.broadcast %57 : vector<1x8x1xf32> to vector<1x8x8xf32>
    %59 = arith.subf %55, %58 : vector<1x8x8xf32>
    %60 = math.exp %59 : vector<1x8x8xf32>
    %cst_26 = arith.constant dense<0.000000e+00> : vector<1x8xf32>
    %61 = vector.multi_reduction <add>, %60, %cst_26 [2] : vector<1x8x8xf32> to vector<1x8xf32>
    %62 = vector.shape_cast %61 : vector<1x8xf32> to vector<1x8x1xf32>
    %63 = tpu.reciprocal %62 {approx = true} : vector<1x8x1xf32> -> vector<1x8x1xf32>
    %64 = vector.broadcast %63 : vector<1x8x1xf32> to vector<1x8x8xf32>
    %65 = arith.mulf %60, %64 : vector<1x8x8xf32>
    %66 = arith.truncf %65 : vector<1x8x8xf32> to vector<1x8x8xbf16>
    "tpu.trace_start"() <{level = 10 : i32, message = "bqk,bkd->bqd"}> : () -> ()
    %cst_27 = arith.constant dense<0.000000e+00> : vector<1x8x8xf32>
    %67 = tpu.matmul %66, %51, %cst_27 {dimension_numbers = #tpu.dot_dimension_numbers<[2], [1], [1], [2], [0, 0, 0, 1, 1, 2], [0], [0]>} : vector<1x8x8xbf16>, vector<1x8x8xbf16>, vector<1x8x8xf32> -> vector<1x8x8xf32>
    "tpu.trace_stop"() : () -> ()
    %68 = arith.truncf %67 : vector<1x8x8xf32> to vector<1x8x8xbf16>
    %c0_28 = arith.constant 0 : index
    %c0_29 = arith.constant 0 : index
    %c0_30 = arith.constant 0 : index
    %69 = vector.load %arg20[%c0_28, %c0_29, %c0_30] : memref<1x8x32xbf16, #tpu.memory_space<vmem>>, vector<1x8x8xbf16>
    tpu.vector_store %arg20[%c0_28, %c0_29, %c0_30], %68 {strides = array<i32>} : memref<1x8x32xbf16, #tpu.memory_space<vmem>>, vector<1x8x8xbf16>,
    %70 = vector.extract_strided_slice %46 {offsets = [0, 0, 8], sizes = [1, 8, 8], strides = [1, 1, 1]} : vector<1x8x32xbf16> to vector<1x8x8xbf16>
    %71 = vector.extract_strided_slice %49 {offsets = [0, 0, 8], sizes = [1, 8, 8], strides = [1, 1, 1]} : vector<1x8x32xbf16> to vector<1x8x8xbf16>
    %72 = vector.extract_strided_slice %43 {offsets = [0, 0, 8], sizes = [1, 8, 8], strides = [1, 1, 1]} : vector<1x8x32xbf16> to vector<1x8x8xbf16>
    "tpu.trace_start"() <{level = 10 : i32, message = "bqd,bkd->bqk"}> : () -> ()
    %cst_31 = arith.constant dense<0.000000e+00> : vector<1x8x8xf32>
    %73 = tpu.matmul %72, %70, %cst_31 {dimension_numbers = #tpu.dot_dimension_numbers<[2], [2], [1], [1], [0, 0, 0, 1, 1, 1], [0], [0]>} : vector<1x8x8xbf16>, vector<1x8x8xbf16>, vector<1x8x8xf32> -> vector<1x8x8xf32>
    "tpu.trace_stop"() : () -> ()
    %74 = vector.broadcast %5 : vector<1x1x8xf32> to vector<1x8x8xf32>
    %75 = arith.addf %73, %74 : vector<1x8x8xf32>
    %cst_32 = arith.constant dense<0xFF800000> : vector<1x8xf32>
    %76 = vector.multi_reduction <maximumf>, %75, %cst_32 [2] : vector<1x8x8xf32> to vector<1x8xf32>
    %77 = vector.shape_cast %76 : vector<1x8xf32> to vector<1x8x1xf32>
    %78 = vector.broadcast %77 : vector<1x8x1xf32> to vector<1x8x8xf32>
    %79 = arith.subf %75, %78 : vector<1x8x8xf32>
    %80 = math.exp %79 : vector<1x8x8xf32>
    %cst_33 = arith.constant dense<0.000000e+00> : vector<1x8xf32>
    %81 = vector.multi_reduction <add>, %80, %cst_33 [2] : vector<1x8x8xf32> to vector<1x8xf32>
    %82 = vector.shape_cast %81 : vector<1x8xf32> to vector<1x8x1xf32>
    %83 = tpu.reciprocal %82 {approx = true} : vector<1x8x1xf32> -> vector<1x8x1xf32>
    %84 = vector.broadcast %83 : vector<1x8x1xf32> to vector<1x8x8xf32>
    %85 = arith.mulf %80, %84 : vector<1x8x8xf32>
    %86 = arith.truncf %85 : vector<1x8x8xf32> to vector<1x8x8xbf16>
    "tpu.trace_start"() <{level = 10 : i32, message = "bqk,bkd->bqd"}> : () -> ()
    %cst_34 = arith.constant dense<0.000000e+00> : vector<1x8x8xf32>
    %87 = tpu.matmul %86, %71, %cst_34 {dimension_numbers = #tpu.dot_dimension_numbers<[2], [1], [1], [2], [0, 0, 0, 1, 1, 2], [0], [0]>} : vector<1x8x8xbf16>, vector<1x8x8xbf16>, vector<1x8x8xf32> -> vector<1x8x8xf32>
    "tpu.trace_stop"() : () -> ()
    %88 = arith.truncf %87 : vector<1x8x8xf32> to vector<1x8x8xbf16>
    %c0_35 = arith.constant 0 : index
    %c0_36 = arith.constant 0 : index
    %c8 = arith.constant 8 : index
    %89 = vector.load %arg20[%c0_35, %c0_36, %c8] : memref<1x8x32xbf16, #tpu.memory_space<vmem>>, vector<1x8x8xbf16>
    tpu.vector_store %arg20[%c0_35, %c0_36, %c8], %88 {strides = array<i32>} : memref<1x8x32xbf16, #tpu.memory_space<vmem>>, vector<1x8x8xbf16>,
    %90 = vector.extract_strided_slice %46 {offsets = [0, 0, 16], sizes = [1, 8, 8], strides = [1, 1, 1]} : vector<1x8x32xbf16> to vector<1x8x8xbf16>
    %91 = vector.extract_strided_slice %49 {offsets = [0, 0, 16], sizes = [1, 8, 8], strides = [1, 1, 1]} : vector<1x8x32xbf16> to vector<1x8x8xbf16>
    %92 = vector.extract_strided_slice %43 {offsets = [0, 0, 16], sizes = [1, 8, 8], strides = [1, 1, 1]} : vector<1x8x32xbf16> to vector<1x8x8xbf16>
    "tpu.trace_start"() <{level = 10 : i32, message = "bqd,bkd->bqk"}> : () -> ()
    %cst_37 = arith.constant dense<0.000000e+00> : vector<1x8x8xf32>
    %93 = tpu.matmul %92, %90, %cst_37 {dimension_numbers = #tpu.dot_dimension_numbers<[2], [2], [1], [1], [0, 0, 0, 1, 1, 1], [0], [0]>} : vector<1x8x8xbf16>, vector<1x8x8xbf16>, vector<1x8x8xf32> -> vector<1x8x8xf32>
    "tpu.trace_stop"() : () -> ()
    %94 = vector.broadcast %5 : vector<1x1x8xf32> to vector<1x8x8xf32>
    %95 = arith.addf %93, %94 : vector<1x8x8xf32>
    %cst_38 = arith.constant dense<0xFF800000> : vector<1x8xf32>
    %96 = vector.multi_reduction <maximumf>, %95, %cst_38 [2] : vector<1x8x8xf32> to vector<1x8xf32>
    %97 = vector.shape_cast %96 : vector<1x8xf32> to vector<1x8x1xf32>
    %98 = vector.broadcast %97 : vector<1x8x1xf32> to vector<1x8x8xf32>
    %99 = arith.subf %95, %98 : vector<1x8x8xf32>
    %100 = math.exp %99 : vector<1x8x8xf32>
    %cst_39 = arith.constant dense<0.000000e+00> : vector<1x8xf32>
    %101 = vector.multi_reduction <add>, %100, %cst_39 [2] : vector<1x8x8xf32> to vector<1x8xf32>
    %102 = vector.shape_cast %101 : vector<1x8xf32> to vector<1x8x1xf32>
    %103 = tpu.reciprocal %102 {approx = true} : vector<1x8x1xf32> -> vector<1x8x1xf32>
    %104 = vector.broadcast %103 : vector<1x8x1xf32> to vector<1x8x8xf32>
    %105 = arith.mulf %100, %104 : vector<1x8x8xf32>
    %106 = arith.truncf %105 : vector<1x8x8xf32> to vector<1x8x8xbf16>
    "tpu.trace_start"() <{level = 10 : i32, message = "bqk,bkd->bqd"}> : () -> ()
    %cst_40 = arith.constant dense<0.000000e+00> : vector<1x8x8xf32>
    %107 = tpu.matmul %106, %91, %cst_40 {dimension_numbers = #tpu.dot_dimension_numbers<[2], [1], [1], [2], [0, 0, 0, 1, 1, 2], [0], [0]>} : vector<1x8x8xbf16>, vector<1x8x8xbf16>, vector<1x8x8xf32> -> vector<1x8x8xf32>
    "tpu.trace_stop"() : () -> ()
    %108 = arith.truncf %107 : vector<1x8x8xf32> to vector<1x8x8xbf16>
    %c0_41 = arith.constant 0 : index
    %c0_42 = arith.constant 0 : index
    %c16 = arith.constant 16 : index
    %109 = vector.load %arg20[%c0_41, %c0_42, %c16] : memref<1x8x32xbf16, #tpu.memory_space<vmem>>, vector<1x8x8xbf16>
    tpu.vector_store %arg20[%c0_41, %c0_42, %c16], %108 {strides = array<i32>} : memref<1x8x32xbf16, #tpu.memory_space<vmem>>, vector<1x8x8xbf16>,
    %110 = vector.extract_strided_slice %46 {offsets = [0, 0, 24], sizes = [1, 8, 8], strides = [1, 1, 1]} : vector<1x8x32xbf16> to vector<1x8x8xbf16>
    %111 = vector.extract_strided_slice %49 {offsets = [0, 0, 24], sizes = [1, 8, 8], strides = [1, 1, 1]} : vector<1x8x32xbf16> to vector<1x8x8xbf16>
    %112 = vector.extract_strided_slice %43 {offsets = [0, 0, 24], sizes = [1, 8, 8], strides = [1, 1, 1]} : vector<1x8x32xbf16> to vector<1x8x8xbf16>
    "tpu.trace_start"() <{level = 10 : i32, message = "bqd,bkd->bqk"}> : () -> ()
    %cst_43 = arith.constant dense<0.000000e+00> : vector<1x8x8xf32>
    %113 = tpu.matmul %112, %110, %cst_43 {dimension_numbers = #tpu.dot_dimension_numbers<[2], [2], [1], [1], [0, 0, 0, 1, 1, 1], [0], [0]>} : vector<1x8x8xbf16>, vector<1x8x8xbf16>, vector<1x8x8xf32> -> vector<1x8x8xf32>
    "tpu.trace_stop"() : () -> ()
    %114 = vector.broadcast %5 : vector<1x1x8xf32> to vector<1x8x8xf32>
    %115 = arith.addf %113, %114 : vector<1x8x8xf32>
    %cst_44 = arith.constant dense<0xFF800000> : vector<1x8xf32>
    %116 = vector.multi_reduction <maximumf>, %115, %cst_44 [2] : vector<1x8x8xf32> to vector<1x8xf32>
    %117 = vector.shape_cast %116 : vector<1x8xf32> to vector<1x8x1xf32>
    %118 = vector.broadcast %117 : vector<1x8x1xf32> to vector<1x8x8xf32>
    %119 = arith.subf %115, %118 : vector<1x8x8xf32>
    %120 = math.exp %119 : vector<1x8x8xf32>
    %cst_45 = arith.constant dense<0.000000e+00> : vector<1x8xf32>
    %121 = vector.multi_reduction <add>, %120, %cst_45 [2] : vector<1x8x8xf32> to vector<1x8xf32>
    %122 = vector.shape_cast %121 : vector<1x8xf32> to vector<1x8x1xf32>
    %123 = tpu.reciprocal %122 {approx = true} : vector<1x8x1xf32> -> vector<1x8x1xf32>
    %124 = vector.broadcast %123 : vector<1x8x1xf32> to vector<1x8x8xf32>
    %125 = arith.mulf %120, %124 : vector<1x8x8xf32>
    %126 = arith.truncf %125 : vector<1x8x8xf32> to vector<1x8x8xbf16>
    "tpu.trace_start"() <{level = 10 : i32, message = "bqk,bkd->bqd"}> : () -> ()
    %cst_46 = arith.constant dense<0.000000e+00> : vector<1x8x8xf32>
    %127 = tpu.matmul %126, %111, %cst_46 {dimension_numbers = #tpu.dot_dimension_numbers<[2], [1], [1], [2], [0, 0, 0, 1, 1, 2], [0], [0]>} : vector<1x8x8xbf16>, vector<1x8x8xbf16>, vector<1x8x8xf32> -> vector<1x8x8xf32>
    "tpu.trace_stop"() : () -> ()
    %128 = arith.truncf %127 : vector<1x8x8xf32> to vector<1x8x8xbf16>
    %c0_47 = arith.constant 0 : index
    %c0_48 = arith.constant 0 : index
    %c24 = arith.constant 24 : index
    %129 = vector.load %arg20[%c0_47, %c0_48, %c24] : memref<1x8x32xbf16, #tpu.memory_space<vmem>>, vector<1x8x8xbf16>
    tpu.vector_store %arg20[%c0_47, %c0_48, %c24], %128 {strides = array<i32>} : memref<1x8x32xbf16, #tpu.memory_space<vmem>>, vector<1x8x8xbf16>,
    %c0_49 = arith.constant 0 : index
    %c0_50 = arith.constant 0 : index
    %c0_51 = arith.constant 0 : index
    %130 = vector.load %arg20[%c0_49, %c0_50, %c0_51] : memref<1x8x32xbf16, #tpu.memory_space<vmem>>, vector<1x8x32xbf16>
    %131 = vector.shape_cast %130 : vector<1x8x32xbf16> to vector<8x32xbf16>
    %c0_52 = arith.constant 0 : index
    %c0_53 = arith.constant 0 : index
    %c0_54 = arith.constant 0 : index
    %132 = vector.load %arg6[%c0_52, %c0_53, %c0_54] : memref<1x32x32xbf16, #tpu.memory_space<vmem>>, vector<1x32x32xbf16>
    %133 = vector.shape_cast %132 : vector<1x32x32xbf16> to vector<32x32xbf16>
    %cst_55 = arith.constant dense<0.000000e+00> : vector<8x32xf32>
    %134 = tpu.matmul %131, %133, %cst_55 {dimension_numbers = #tpu.dot_dimension_numbers<[1], [0], [0], [1], [0, 0, 1, 1], [], []>} : vector<8x32xbf16>, vector<32x32xbf16>, vector<8x32xf32> -> vector<8x32xf32>
    %135 = arith.addf %4, %134 : vector<8x32xf32>
    %c0_56 = arith.constant 0 : index
    %c0_57 = arith.constant 0 : index
    %c0_58 = arith.constant 0 : index
    %136 = vector.load %arg7[%c0_56, %c0_57, %c0_58] : memref<1x1x32xf32, #tpu.memory_space<vmem>>, vector<1x1x32xf32>
    %137 = vector.shape_cast %136 : vector<1x1x32xf32> to vector<1x32xf32>
    %138 = vector.broadcast %137 : vector<1x32xf32> to vector<8x32xf32>
    %139 = arith.addf %135, %138 : vector<8x32xf32>
    %c0_59 = arith.constant 0 : index
    %c0_60 = arith.constant 0 : index
    %c0_61 = arith.constant 0 : index
    %140 = vector.load %arg14[%c0_59, %c0_60, %c0_61] : memref<1x1x32xf32, #tpu.memory_space<vmem>>, vector<1x1x32xf32>
    %141 = vector.shape_cast %140 : vector<1x1x32xf32> to vector<1x32xf32>
    %c0_62 = arith.constant 0 : index
    %c0_63 = arith.constant 0 : index
    %c0_64 = arith.constant 0 : index
    %142 = vector.load %arg15[%c0_62, %c0_63, %c0_64] : memref<1x1x32xf32, #tpu.memory_space<vmem>>, vector<1x1x32xf32>
    %143 = vector.shape_cast %142 : vector<1x1x32xf32> to vector<1x32xf32>
    %cst_65 = arith.constant dense<0.000000e+00> : vector<8xf32>
    %144 = vector.multi_reduction <add>, %139, %cst_65 [1] : vector<8x32xf32> to vector<8xf32>
    %145 = vector.shape_cast %144 : vector<8xf32> to vector<8x1xf32>
    %cst_66 = arith.constant 3.200000e+01 : f32
    %146 = vector.broadcast %cst_66 : f32 to vector<8x1xf32>
    %147 = arith.divf %145, %146 : vector<8x1xf32>
    %148 = vector.broadcast %147 : vector<8x1xf32> to vector<8x32xf32>
    %149 = arith.subf %139, %148 : vector<8x32xf32>
    %150 = arith.mulf %149, %149 : vector<8x32xf32>
    %cst_67 = arith.constant dense<0.000000e+00> : vector<8xf32>
    %151 = vector.multi_reduction <add>, %150, %cst_67 [1] : vector<8x32xf32> to vector<8xf32>
    %152 = vector.shape_cast %151 : vector<8xf32> to vector<8x1xf32>
    %cst_68 = arith.constant 0.0322580636 : f32
    %153 = vector.broadcast %cst_68 : f32 to vector<8x1xf32>
    %154 = arith.mulf %152, %153 : vector<8x1xf32>
    %155 = math.sqrt %154 : vector<8x1xf32>
    %cst_69 = arith.constant 9.99999997E-7 : f32
    %156 = vector.broadcast %cst_69 : f32 to vector<8x1xf32>
    %157 = arith.addf %155, %156 : vector<8x1xf32>
    %158 = tpu.reciprocal %157 : vector<8x1xf32> -> vector<8x1xf32>
    %159 = vector.broadcast %158 : vector<8x1xf32> to vector<8x32xf32>
    %160 = arith.mulf %149, %159 : vector<8x32xf32>
    %161 = vector.broadcast %141 : vector<1x32xf32> to vector<8x32xf32>
    %162 = arith.mulf %161, %160 : vector<8x32xf32>
    %163 = vector.broadcast %143 : vector<1x32xf32> to vector<8x32xf32>
    %164 = arith.addf %162, %163 : vector<8x32xf32>
    %165 = arith.truncf %164 : vector<8x32xf32> to vector<8x32xbf16>
    %c0_70 = arith.constant 0 : index
    %c0_71 = arith.constant 0 : index
    %c0_72 = arith.constant 0 : index
    %166 = vector.load %arg8[%c0_70, %c0_71, %c0_72] : memref<1x32x64xbf16, #tpu.memory_space<vmem>>, vector<1x32x64xbf16>
    %167 = vector.shape_cast %166 : vector<1x32x64xbf16> to vector<32x64xbf16>
    %cst_73 = arith.constant dense<0.000000e+00> : vector<8x64xf32>
    %168 = tpu.matmul %165, %167, %cst_73 {dimension_numbers = #tpu.dot_dimension_numbers<[1], [0], [0], [1], [0, 0, 1, 1], [], []>} : vector<8x32xbf16>, vector<32x64xbf16>, vector<8x64xf32> -> vector<8x64xf32>
    %c0_74 = arith.constant 0 : index
    %c0_75 = arith.constant 0 : index
    %c0_76 = arith.constant 0 : index
    %169 = vector.load %arg9[%c0_74, %c0_75, %c0_76] : memref<1x1x64xf32, #tpu.memory_space<vmem>>, vector<1x1x64xf32>
    %170 = vector.shape_cast %169 : vector<1x1x64xf32> to vector<1x64xf32>
    %171 = vector.broadcast %170 : vector<1x64xf32> to vector<8x64xf32>
    %172 = arith.addf %168, %171 : vector<8x64xf32>
    %cst_77 = arith.constant 0.000000e+00 : f32
    %173 = vector.broadcast %cst_77 : f32 to vector<8x64xf32>
    %174 = arith.maximumf %172, %173 : vector<8x64xf32>
    %175 = arith.truncf %174 : vector<8x64xf32> to vector<8x64xbf16>
    %c0_78 = arith.constant 0 : index
    %c0_79 = arith.constant 0 : index
    %c0_80 = arith.constant 0 : index
    %176 = vector.load %arg10[%c0_78, %c0_79, %c0_80] : memref<1x64x32xbf16, #tpu.memory_space<vmem>>, vector<1x64x32xbf16>
    %177 = vector.shape_cast %176 : vector<1x64x32xbf16> to vector<64x32xbf16>
    %cst_81 = arith.constant dense<0.000000e+00> : vector<8x32xf32>
    %178 = tpu.matmul %175, %177, %cst_81 {dimension_numbers = #tpu.dot_dimension_numbers<[1], [0], [0], [1], [0, 0, 1, 1], [], []>} : vector<8x64xbf16>, vector<64x32xbf16>, vector<8x32xf32> -> vector<8x32xf32>
    %179 = arith.addf %139, %178 : vector<8x32xf32>
    %c0_82 = arith.constant 0 : index
    %c0_83 = arith.constant 0 : index
    %c0_84 = arith.constant 0 : index
    %180 = vector.load %arg11[%c0_82, %c0_83, %c0_84] : memref<1x1x32xf32, #tpu.memory_space<vmem>>, vector<1x1x32xf32>
    %181 = vector.shape_cast %180 : vector<1x1x32xf32> to vector<1x32xf32>
    %182 = vector.broadcast %181 : vector<1x32xf32> to vector<8x32xf32>
    %183 = arith.addf %179, %182 : vector<8x32xf32>
    %184 = vector.shape_cast %183 : vector<8x32xf32> to vector<1x8x32xf32>
    %c0_85 = arith.constant 0 : index
    %c0_86 = arith.constant 0 : index
    %c0_87 = arith.constant 0 : index
    %185 = vector.load %arg19[%c0_85, %c0_86, %c0_87] : memref<1x8x32xf32, #tpu.memory_space<vmem>>, vector<1x8x32xf32>
    tpu.vector_store %arg19[%c0_85, %c0_86, %c0_87], %184 {strides = array<i32>} : memref<1x8x32xf32, #tpu.memory_space<vmem>>, vector<1x8x32xf32>,
    %c1_i32 = arith.constant 1 : i32
    %186 = arith.cmpi eq, %arg1, %c1_i32 : i32
    %187 = arith.extui %186 : i1 to i32
    %c0_i32_88 = arith.constant 0 : i32
    %188 = arith.cmpi ne, %187, %c0_i32_88 : i32
    scf.if %188 {
      %c0_89 = arith.constant 0 : index
      %c0_90 = arith.constant 0 : index
      %189 = vector.load %arg16[%c0_89, %c0_90] : memref<1x32xf32, #tpu.memory_space<vmem>>, vector<1x32xf32>
      %c0_91 = arith.constant 0 : index
      %c0_92 = arith.constant 0 : index
      %190 = vector.load %arg17[%c0_91, %c0_92] : memref<1x32xf32, #tpu.memory_space<vmem>>, vector<1x32xf32>
      %cst_93 = arith.constant dense<0.000000e+00> : vector<8xf32>
      %191 = vector.multi_reduction <add>, %183, %cst_93 [1] : vector<8x32xf32> to vector<8xf32>
      %192 = vector.shape_cast %191 : vector<8xf32> to vector<8x1xf32>
      %cst_94 = arith.constant 3.200000e+01 : f32
      %193 = vector.broadcast %cst_94 : f32 to vector<8x1xf32>
      %194 = arith.divf %192, %193 : vector<8x1xf32>
      %195 = vector.broadcast %194 : vector<8x1xf32> to vector<8x32xf32>
      %196 = arith.subf %183, %195 : vector<8x32xf32>
      %197 = arith.mulf %196, %196 : vector<8x32xf32>
      %cst_95 = arith.constant dense<0.000000e+00> : vector<8xf32>
      %198 = vector.multi_reduction <add>, %197, %cst_95 [1] : vector<8x32xf32> to vector<8xf32>
      %199 = vector.shape_cast %198 : vector<8xf32> to vector<8x1xf32>
      %cst_96 = arith.constant 0.0322580636 : f32
      %200 = vector.broadcast %cst_96 : f32 to vector<8x1xf32>
      %201 = arith.mulf %199, %200 : vector<8x1xf32>
      %202 = math.sqrt %201 : vector<8x1xf32>
      %cst_97 = arith.constant 9.99999997E-7 : f32
      %203 = vector.broadcast %cst_97 : f32 to vector<8x1xf32>
      %204 = arith.addf %202, %203 : vector<8x1xf32>
      %205 = tpu.reciprocal %204 : vector<8x1xf32> -> vector<8x1xf32>
      %206 = vector.broadcast %205 : vector<8x1xf32> to vector<8x32xf32>
      %207 = arith.mulf %196, %206 : vector<8x32xf32>
      %208 = vector.broadcast %189 : vector<1x32xf32> to vector<8x32xf32>
      %209 = arith.mulf %208, %207 : vector<8x32xf32>
      %210 = vector.broadcast %190 : vector<1x32xf32> to vector<8x32xf32>
      %211 = arith.addf %209, %210 : vector<8x32xf32>
      %212 = vector.shape_cast %211 : vector<8x32xf32> to vector<1x8x32xf32>
      %c0_98 = arith.constant 0 : index
      %c0_99 = arith.constant 0 : index
      %c0_100 = arith.constant 0 : index
      %213 = vector.load %arg18[%c0_98, %c0_99, %c0_100] : memref<1x8x32xf32, #tpu.memory_space<vmem>>, vector<1x8x32xf32>
      tpu.vector_store %arg18[%c0_98, %c0_99, %c0_100], %212 {strides = array<i32>} : memref<1x8x32xf32, #tpu.memory_space<vmem>>, vector<1x8x32xf32>,
    } else {
    }
    return
  }
  func.func @transform_0(%arg0: i32, %arg1: i32) -> (i32, i32, i32) {
    %c0_i32 = arith.constant 0 : i32
    %c0_i32_0 = arith.constant 0 : i32
    %c0_i32_1 = arith.constant 0 : i32
    return %arg0, %c0_i32, %c0_i32_0 : i32, i32, i32
  }
  func.func @transform_1(%arg0: i32, %arg1: i32) -> (i32, i32, i32) {
    %c0_i32 = arith.constant 0 : i32
    %c0_i32_0 = arith.constant 0 : i32
    %c0_i32_1 = arith.constant 0 : i32
    return %arg0, %c0_i32, %c0_i32_0 : i32, i32, i32
  }
  func.func @transform_2(%arg0: i32, %arg1: i32) -> (i32, i32, i32) {
    %c0_i32 = arith.constant 0 : i32
    %c0_i32_0 = arith.constant 0 : i32
    %c0_i32_1 = arith.constant 0 : i32
    return %arg1, %c0_i32, %c0_i32_0 : i32, i32, i32
  }
  func.func @transform_3(%arg0: i32, %arg1: i32) -> (i32, i32, i32) {
    %c0_i32 = arith.constant 0 : i32
    %c0_i32_0 = arith.constant 0 : i32
    %c0_i32_1 = arith.constant 0 : i32
    return %arg1, %c0_i32, %c0_i32_0 : i32, i32, i32
  }
  func.func @transform_4(%arg0: i32, %arg1: i32) -> (i32, i32, i32) {
    %c0_i32 = arith.constant 0 : i32
    %c0_i32_0 = arith.constant 0 : i32
    %c0_i32_1 = arith.constant 0 : i32
    return %arg1, %c0_i32, %c0_i32_0 : i32, i32, i32
  }
  func.func @transform_5(%arg0: i32, %arg1: i32) -> (i32, i32, i32) {
    %c0_i32 = arith.constant 0 : i32
    %c0_i32_0 = arith.constant 0 : i32
    %c0_i32_1 = arith.constant 0 : i32
    return %arg1, %c0_i32, %c0_i32_0 : i32, i32, i32
  }
  func.func @transform_6(%arg0: i32, %arg1: i32) -> (i32, i32, i32) {
    %c0_i32 = arith.constant 0 : i32
    %c0_i32_0 = arith.constant 0 : i32
    %c0_i32_1 = arith.constant 0 : i32
    return %arg1, %c0_i32, %c0_i32_0 : i32, i32, i32
  }
  func.func @transform_7(%arg0: i32, %arg1: i32) -> (i32, i32, i32) {
    %c0_i32 = arith.constant 0 : i32
    %c0_i32_0 = arith.constant 0 : i32
    %c0_i32_1 = arith.constant 0 : i32
    return %arg1, %c0_i32, %c0_i32_0 : i32, i32, i32
  }
  func.func @transform_8(%arg0: i32, %arg1: i32) -> (i32, i32, i32) {
    %c0_i32 = arith.constant 0 : i32
    %c0_i32_0 = arith.constant 0 : i32
    %c0_i32_1 = arith.constant 0 : i32
    return %arg1, %c0_i32, %c0_i32_0 : i32, i32, i32
  }
  func.func @transform_9(%arg0: i32, %arg1: i32) -> (i32, i32, i32) {
    %c0_i32 = arith.constant 0 : i32
    %c0_i32_0 = arith.constant 0 : i32
    %c0_i32_1 = arith.constant 0 : i32
    return %arg1, %c0_i32, %c0_i32_0 : i32, i32, i32
  }
  func.func @transform_10(%arg0: i32, %arg1: i32) -> (i32, i32, i32) {
    %c0_i32 = arith.constant 0 : i32
    %c0_i32_0 = arith.constant 0 : i32
    %c0_i32_1 = arith.constant 0 : i32
    return %arg1, %c0_i32, %c0_i32_0 : i32, i32, i32
  }
  func.func @transform_11(%arg0: i32, %arg1: i32) -> (i32, i32, i32) {
    %c0_i32 = arith.constant 0 : i32
    %c0_i32_0 = arith.constant 0 : i32
    %c0_i32_1 = arith.constant 0 : i32
    return %arg1, %c0_i32, %c0_i32_0 : i32, i32, i32
  }
  func.func @transform_12(%arg0: i32, %arg1: i32) -> (i32, i32, i32) {
    %c0_i32 = arith.constant 0 : i32
    %c0_i32_0 = arith.constant 0 : i32
    %c0_i32_1 = arith.constant 0 : i32
    return %arg1, %c0_i32, %c0_i32_0 : i32, i32, i32
  }
  func.func @transform_13(%arg0: i32, %arg1: i32) -> (i32, i32, i32) {
    %c0_i32 = arith.constant 0 : i32
    %c0_i32_0 = arith.constant 0 : i32
    %c0_i32_1 = arith.constant 0 : i32
    return %arg1, %c0_i32, %c0_i32_0 : i32, i32, i32
  }
  func.func @transform_14(%arg0: i32, %arg1: i32) -> (i32, i32) {
    %c0_i32 = arith.constant 0 : i32
    %c0_i32_0 = arith.constant 0 : i32
    %c0_i32_1 = arith.constant 0 : i32
    return %c0_i32, %c0_i32_0 : i32, i32
  }
  func.func @transform_15(%arg0: i32, %arg1: i32) -> (i32, i32) {
    %c0_i32 = arith.constant 0 : i32
    %c0_i32_0 = arith.constant 0 : i32
    %c0_i32_1 = arith.constant 0 : i32
    return %c0_i32, %c0_i32_0 : i32, i32
  }
  func.func @transform_16(%arg0: i32, %arg1: i32) -> (i32, i32, i32) {
    %c0_i32 = arith.constant 0 : i32
    %c0_i32_0 = arith.constant 0 : i32
    %c0_i32_1 = arith.constant 0 : i32
    return %arg0, %c0_i32, %c0_i32_0 : i32, i32, i32
  }
}

</mosaic_0001>

<bundles_post_ra>
// kernel: tpu_custom_call.1
= control target key start
LH: loop header
LB: loop body
LE: loop exit
PB: predicated region body
PF: predicated region fallthrough
CT: control target
= control target key end

     0   :  { %s2829_s0 = inlined_call_operand.hbm [shape: f32[2,8,32], index: 0, kind: input, shape index: {}]   ;;  %s2830_s1 = inlined_call_operand.vmem [shape: f32[2,1,8], index: 1, kind: input, shape index: {}]   ;;  %s2831_s2 = inlined_call_operand.vmem [shape: bf16[2,32,96], index: 2, kind: input, shape index: {}]   ;;  %s2832_s3 = inlined_call_operand.vmem [shape: f32[2,1,96], index: 3, kind: input, shape index: {}]   ;;  %s2833_s4 = inlined_call_operand.vmem [shape: bf16[2,32,32], index: 4, kind: input, shape index: {}]   ;;  %s2834_s5 = inlined_call_operand.vmem [shape: f32[2,1,32], index: 5, kind: input, shape index: {}]   ;;  %s2835_s6 = inlined_call_operand.vmem [shape: bf16[2,32,64], index: 6, kind: input, shape index: {}]   ;;  %s2836_s7 = inlined_call_operand.vmem [shape: f32[2,1,64], index: 7, kind: input, shape index: {}]   ;;  %s2837_s8 = inlined_call_operand.vmem [shape: bf16[2,64,32], index: 8, kind: input, shape index: {}]   ;;  %s2838_s9 = inlined_call_operand.vmem [shape: f32[2,1,32], index: 9, kind: input, shape index: {}]   ;;  %s2839_s10 = inlined_call_operand.vmem [shape: f32[2,1,32], index: 10, kind: input, shape index: {}]   ;;  %s2840_s11 = inlined_call_operand.vmem [shape: f32[2,1,32], index: 11, kind: input, shape index: {}]   ;;  %s2841_s12 = inlined_call_operand.vmem [shape: f32[2,1,32], index: 12, kind: input, shape index: {}]   ;;  %s2842_s13 = inlined_call_operand.vmem [shape: f32[2,1,32], index: 13, kind: input, shape index: {}]   ;;  %s2843_s14 = inlined_call_operand.vmem [shape: f32[1,32], index: 14, kind: input, shape index: {}]   ;;  %s2844_s15 = inlined_call_operand.vmem [shape: f32[1,32], index: 15, kind: input, shape index: {}]   ;;  %s2845_s16 = inlined_call_operand.hbm [shape: f32[2,8,32], index: 16, kind: output, shape index: {}]  }
   0x1   :  { %2863 = sst [smem:[#allocation24_spill]] %s2829_s0 }
   0x2   :  { %2864 = sst [smem:[#allocation25_spill]] %s2830_s1 }
   0x3   :  { %2865 = sst [smem:[#allocation26_spill]] %s2831_s2 }
   0x4   :  { %2866 = sst [smem:[#allocation27_spill]] %s2833_s4 }
   0x5   :  { %2867 = sst [smem:[#allocation28_spill]] %s2834_s5 }
   0x6   :  { %2868 = sst [smem:[#allocation29_spill]] %s2835_s6 }
   0x7   :  { %2869 = sst [smem:[#allocation30_spill]] %s2836_s7 }
   0x8   :  { %2870 = sst [smem:[#allocation31_spill]] %s2837_s8 }
   0x9   :  { %2871 = sst [smem:[#allocation32_spill]] %s2840_s11 }
   0xa   :  { %2872 = sst [smem:[#allocation33_spill]] %s2841_s12 }
   0xb   :  { %2873 = sst [smem:[#allocation34_spill]] %s2842_s13 }
   0xc   :  { %2874 = sst [smem:[#allocation35_spill]] %s2843_s14 }
   0xd   :  { %2875 = sst [smem:[#allocation36_spill]] %s2844_s15 }
   0xe   :  { %2876 = sst [smem:[#allocation37_spill]] %s2845_s16 }
   0xf   :  { %21 = vsyncpa [#allocation6], 0 }
  0x10   :  { %23 = vsyncpa [#allocation6 + $0x1], 0 }
  0x11   :  { %24 = vsyncpa [#allocation7], 0 }
  0x12   :  { %26 = vsyncpa [#allocation7 + $0x1], 0  ;;  %s2428_s21 = smov 0   ;;  %s2430_s22 = smov 0  }
  0x13   :  { %s2432_s23 = smov 0   ;;  %s2434_s24 = smov 0  }
  0x14   :  { %s2436_s25 = smov 0   ;;  %s2438_s26 = smov 0  }
  0x15   :  { %s2440_s27 = smov 0   ;;  %s2442_s28 = smov 0  }
  0x16 LB: > { %2877 = sst [smem:[#allocation11_spill]] %s2294_s21  ;;  %s1881_s29 = sadd.s32 4294967295, %s2322_s28   ;;  %s2322_s28 = sphi %s2442_s28, %s32_s28   ;;  %s2318_s27 = sphi %s2440_s27, %s2934_s27   ;;  %s2314_s26 = sphi %s2438_s26, %s2933_s26   ;;  %s2310_s25 = sphi %s2436_s25, %s2932_s25   ;;  %s2306_s24 = sphi %s2434_s24, %s2931_s24   ;;  %s2302_s23 = sphi %s2432_s23, %s2930_s23   ;;  %s2298_s22 = sphi %s2430_s22, %s2929_s22   ;;  %s2294_s21 = sphi %s2428_s21, %s2928_s21  }
  0x17   : > { %2878 = sst [smem:[#allocation12_spill]] %s2298_s22  ;;  %s1882_s30 = sadd.s32 4294967294, %s2322_s28  }
  0x18   : > { %2879 = sst [smem:[#allocation13_spill]] %s2302_s23  ;;  %s41_s0 = sadd.s32 1, %s2314_s26 }
  0x19   : > { %2880 = sst [smem:[#allocation14_spill]] %s2310_s25  ;;  %s44_s17 = sadd.s32 1, %s2318_s27 }
  0x1a   : > { %2881 = sst [smem:[#allocation15_spill]] %s2314_s26  ;;  %p42_p0 = scmp.ge.s32.totalorder %s41_s0, 2 }
  0x1b   : > { %2882 = sst [smem:[#allocation16_spill]] %s2318_s27  ;;  %s51_s18 = sadd.s32 1, %s2302_s23 }
  0x1c   : > { %2883 = sst [smem:[#allocation17_spill]] %s2322_s28  ;;  %p58_p1 = scmp.ne.s32.totalorder %s2302_s23, %s2298_s22 }
  0x1d   : > { %p59_p2 = scmp.eq.s32.totalorder %s2322_s28, 0  ;;  %s2936_s0 = smov (%p42_p0, %s41_s0), 0 }
  0x1e   : > { %2884 = sst [smem:[#allocation18_spill]] %s2936_s0  ;;  %s2938_s17 = smov (!%p42_p0, %s44_s17), %s2318_s27 }
  0x1f   : > { %p2479_p3 = por %p59_p2, %p58_p1  ;;  %p64_p4 = scmp.ne.s32.totalorder %s2298_s22, %s2294_s21 }
  0x20   : > { %p46_p5 = scmp.ge.s32.totalorder %s2938_s17, 2  ;;  %p65_p6 = scmp.eq.s32.totalorder %s1881_s29, 0 }
  0x21   : > { %p468_p7 = scmp.eq.s32.totalorder %s1881_s29, 3  ;;  %p474_p8 = scmp.eq.s32.totalorder %s1882_s30, 3 }
  0x22   : > { %s2940_s17 = smov (%p46_p5, %s2938_s17), 0  ;;  %p2487_p9 = por %p65_p6, %p64_p4 }
  0x23   : > { %2886 = sst [smem:[#allocation19_spill]] %s2940_s17  ;;  %p2491_p10 = por %p468_p7, %p58_p1 }
  0x24   : > { %s48_s26 = ssub.s32 %s2318_s27, %s2940_s17  ;;  %p2497_p11 = por %p474_p8, %p64_p4 }
  0x25   : > { %s2888_s0 = scalar_select %p2491_p10, 1, 0 }
  0x26   : > { %s2890_s21 = scalar_select %p2497_p11, 1, 0 }
  0x27   : > { %2889 = sst [smem:[#allocation20_spill]] %s2888_s0  ;;  %p49_p12 = scmp.eq.s32.totalorder %s48_s26, 0 }
  0x28   : > { %2891 = sst [smem:[#allocation21_spill]] %s2890_s21  ;;  %p2073_p13 = scmp.lt.s32.totalorder %s2322_s28, 4 }
  0x29   : > { %s500_s29 = sand.u32 1, %s2302_s23   ;;  %s1886_s15 = sshll.u32 %s2318_s27, 7 }
  0x2a   : > { %s2504_s30 = scalar_select %p49_p12, %s2302_s23, %s51_s18  }
  0x2b   : > { %s1885_s16 = sshll.u32 %s500_s29, 3  ;;  %s2893_s12 = sld [smem:[#allocation24_spill]] }
  0x2c   : > { %2892 = sst [smem:[#allocation22_spill]] %s2504_s30  ;;  %s504_s17 = scalar_lea.vmem [#allocation5], %s1885_s16 }
  0x2d   : > { %s511_s0 = sshll.u32 %s504_s17, 4  ;;  %p2516_p0 = pnand %p2073_p13, %p2479_p3  ;;  %s2512_s0 = int_to_ptr.vmem [resolvable:$true] %s511_s0 }
  0x2e   : > { %s501_s13 = scalar_lea.sflag [#allocation6], %s500_s29 }
  0x2f   : > { %p2196_p5 = pneg %p2516_p0 }
  0x31   : > { %s2510_s11 = scalar_lea.hbm %s2893_s12, %s1886_s15  ;;  %s2199_s17 = scalar_lea.hbm %s2893_s12, 256 }
  0x32   : > { %s2194_s14 = scalar_lea.hbm %s2510_s11, 128  ;;  %p2200_p3 = scmp.lt.u32.totalorder %s2510_s11, %s2893_s12 }
  0x33   : > { %p2195_p4 = scmp.ne.s32.totalorder %s2510_s11, %s2194_s14  ;;  %p2201_p8 = scmp.lt.u32.totalorder %s2199_s17, %s2194_s14 }
  0x34   : > { %p2203_p13 = scmp.lt.u32.totalorder %s2194_s14, %s2510_s11 }
  0x35   : > { %p2197_p6 = pnand %p2196_p5, %p2195_p4  ;;  %p2202_p12 = por %p2201_p8, %p2200_p3 }
  0x37   : > { %p2198_p7 = pneg %p2197_p6  ;;  %p2204_p1 = por %p2203_p13, %p2202_p12 }
  0x39   : > { %p2205_p2 = pnand %p2204_p1, %p2198_p7 }
  0x3b   : > { %2208 = shalt.err (!%p2205_p2)
}
  0x3c   : > { %s2209_s29 = scalar_lea.vmem %s2512_s0, 128  ;;  %s2324_s15 = smov [#allocation5]  }
  0x3d   : > { %p2210_p4 = scmp.ne.s32.totalorder %s2512_s0, %s2209_s29  ;;  %s2214_s16 = sshll.u32 %s2324_s15, 4  ;;  %s2215_s16 = int_to_ptr.vmem [resolvable:$false] %s2214_s16 }
  0x3e   : > { %s2216_s18 = scalar_lea.vmem %s2215_s16, 256  ;;  %p2217_p10 = scmp.lt.s32.totalorder %s2512_s0, %s2215_s16 }
  0x3f   : > { %p2212_p6 = pnand %p2210_p4, %p2196_p5  ;;  %p2218_p3 = scmp.lt.s32.totalorder %s2216_s18, %s2209_s29 }
  0x41   : > { %p2213_p11 = pneg %p2212_p6  ;;  %p2219_p8 = por %p2218_p3, %p2217_p10 }
  0x43   : > { %p2220_p12 = pnand %p2219_p8, %p2213_p11 }
  0x45   : > { %2223 = shalt.err (!%p2220_p12)
}
  0x46   : > { %2068 = dma.hbm_to_vmem [thread:$0]  (!%p2516_p0), %s2510_s11, 128, %s2512_s0, %s501_s13  }
  0x47   : > { %p2895_p1 = scmp.lt.s32.totalorder %s2322_s28, 5  ;;  %p2896_p2 = scmp.ge.s32.totalorder %s2322_s28, 1 }
  0x49   : > { %p603_p5 = pnand %p2896_p2, %p2895_p1 }
  0x4b   : > { %606 = sbr.rel (%p603_p5) target bundleno = 3040 (0xbe0), region = 84 }
  0x52   : > { %s2552_s14 = sand.u32 1, %s2298_s22  }
  0x53   : > { %2897 = sst [smem:[#allocation23_spill]] %s2552_s14  ;;  %s1888_s17 = sshll.u32 %s2552_s14, 3 }
  0x54   : > { %s609_s19 = scalar_lea.sflag [#allocation6], %s2552_s14  ;;  %s612_s29 = scalar_lea.vmem [#allocation5], %s1888_s17 }
  0x55   : > { %2285 = dma.done.wait (%p2487_p9), %s609_s19, 128  }
  0x56   : > { %2287 = vsyncadd (%p2487_p9), %s609_s19, 4294967168  ;;  %p708_p10 = scmp.lt.s32.totalorder %s2310_s25, 1  ;;  %p711_p11 = scmp.lt.s32.totalorder %s2306_s24, 1 }
  0x57   : > { %s2898_s1 = sld [smem:[#allocation25_spill]]  ;;  %s2899_s2 = sld [smem:[#allocation26_spill]] }
  0x58   : > { %s709_s11 = scalar_select %p708_p10, %s2310_s25, 1 }
  0x59   : > { %s2564_s0 = scalar_select %p711_p11, %s2306_s24, 1 }
  0x5a   : > { %s2900_s4 = sld [smem:[#allocation27_spill]]  ;;  %s2902_s6 = sld [smem:[#allocation29_spill]] }
  0x5b   : > { %s1940_s15 = sshll.u32 %s2564_s0, 4  ;;  %s1943_s27 = sshll.u32 %s2564_s0, 5 }
  0x5c   : > { %s2904_s8 = sld [smem:[#allocation31_spill]]  ;;  %s742_s21 = scalar_lea.vmem %s2838_s9, %s2564_s0 }
  0x5d   : > { %s710_s20 = scalar_lea.vmem %s2898_s1, %s709_s11  ;;  %s2577_s26 = scalar_lea.vmem %s2899_s2, %s1940_s15 }
  0x5e   : > { %s745_s1 = scalar_lea.vmem %s2839_s10, %s2564_s0  ;;  %s2906_s12 = sld [smem:[#allocation33_spill]] }
  0x5f   : > { %s2907_s19 = sld [smem:[#allocation34_spill]]  ;;  %p1898_p9 = scmp.ne.s32.totalorder %s2306_s24, 0 }
  0x60   : > { %s2582_s23 = scalar_lea.vmem %s2900_s4, %s1940_s15  ;;  %s2591_s14 = scalar_lea.vmem %s2902_s6, %s1940_s15  ;;  %v760_v0 = vld [vmem:[%s612_s29] sm:$0xff] (!%p1898_p9)  ;;  %vm761_vm0 = vcmask (!%p1898_p9), 261120   ;;  %v763_v1 = vld [vmem:[%s710_s20] sm:$0x1] (!%p1898_p9)  ;;  %vm766_vm2 = vcmask (!%p1898_p9), 57344  }
  0x61   : > { %s2905_s6 = sld [smem:[#allocation32_spill]]  ;;  %759 = sbr.rel (%p1898_p9) target bundleno = 104 (0x68), region = 92  ;;  %762 = vst.msk [vmem:[#allocation2] sm:$0xff] (!%p1898_p9), %vm761_vm0, %v760_v0  ;;  %vm764_vm1 = vcmp.gt.f32.partialorder (!%p1898_p9), %v763_v1, 0.0  ;;  %v2325_v2 = vmov (!%p1898_p9), -1e+09  }
  0x62   : > { %s2601_s30 = scalar_lea.vmem %s2904_s8, %s1943_s27  ;;  %s2623_s8 = scalar_lea.vmem [#allocation8], %s1888_s17  ;;  %v765_v3 = vsel (!%p1898_p9), %vm764_vm1, 0.0, %v2325_v2 }
  0x63   : > { %767 = vst.msk [vmem:[#allocation4] sm:$0x1] (!%p1898_p9), %vm766_vm2, %v765_v3 }
  0x64   : > { %s751_s7 = scalar_lea.vmem %s2906_s12, %s2564_s0 }
  0x65   : > { %s754_s27 = scalar_lea.vmem %s2907_s19, %s2564_s0 }
  0x67   : > { %s748_s25 = scalar_lea.vmem %s2905_s6, %s2564_s0 }
  0x68 PF: > { %v2626_v4 = vld [vmem:[#allocation2] sm:$0xff]  ;;  %vm772_vm3 = vcmask 261120   ;;  %v2326_v12 = vmov 0.0   ;;  %vm2327_vm4 = vmmov 0   ;;  %v2157_v13 = vld [vmem:[%s2577_s26 + $0x8] sm:$0xff]   ;;  %s2329_s12 = smov 120  }
  0x69   : > { %v773_v5 = vsel %vm772_vm3, %v2626_v4, 0.0  ;;  %v2156_v11 = vld [vmem:[%s2577_s26] sm:$0xff]   ;;  %1977 = vmatprep.subr.bf16.mxu0 %v2326_v12  ;;  %1981 = vmatprep.mubr.msk.bf16.mxu0 %vm2327_vm4, %v2326_v12  ;;  %s2909_s26 = scalar_lea.vmem %s2832_s3, %s2564_s0  ;;  %s2330_s13 = smov 88   ;;  %vm887_vm7 = vcmask 64512   ;;  %vm951_vm8 = vcmask 1043456   ;;  %vm996_vm9 = vcmask 60416  }
  0x6a   : > { %774 = vadd.xlane.f32.xlu0 %v773_v5  ;;  %1978 = vmatpush3.bf16.msra.mxu0 %v2156_v11  ;;  %v1899_v23 = vld [vmem:[%s745_s1] ss:$0 sm:$0xff]  ;;  %s2331_s22 = smov 80   ;;  %s2332_s1 = smov 112   ;;  %v1905_v49 = vld [vmem:[#allocation4] ss:$0 sm:$0xff] }
  0x6b   : > { %1985 = vmatprep.subr.bf16.mxu1 %v2326_v12  ;;  %1979 = vmatprep.subr.bf16.mxu0 %v2326_v12  ;;  %v1900_v25 = vld [vmem:[%s748_s25] ss:$0 sm:$0xff]  ;;  %s2328_s25 = smov 96   ;;  %s2333_s15 = smov 72   ;;  %vm1116_vm10 = vcmask 126016   ;;  %vm1235_vm11 = vcmask 191616  }
  0x6c   : > { %1987 = vmatprep.mubr.msk.bf16.mxu1 %vm2327_vm4, %v2326_v12  ;;  %v1901_v29 = vld [vmem:[%s2909_s26] ss:$0 sm:$0xff]  ;;  %s2334_s11 = smov 104   ;;  %s2335_s16 = smov 64   ;;  %vm1354_vm12 = vcmask 257216   ;;  %vm1562_vm15 = vcmask 523264  }
  0x6d   : > { %s2336_s18 = smov 56   ;;  %s2337_s2 = smov 48  }
  0x6e   : > { %1980 = vmatpush3.bf16.msra.mxu0 %v2157_v13  ;;  %s2338_s19 = smov 40   ;;  %s2339_s4 = smov 8  }
  0x6f   : > { %1991 = vmatprep.subr.bf16.mxu0 %v2326_v12  ;;  %s2340_s5 = smov 16   ;;  %s2341_s6 = smov 24  }
  0x70   : > { %s2910_s17 = sld [smem:[#allocation28_spill]]  ;;  %p1933_p0 = scmp.ne.s32.totalorder %s2306_s24, 1 }
  0x76   : > { %s2911_s29 = scalar_lea.vmem %s2910_s17, %s2564_s0 }
  0xf7   : > { %v775_v6 = vpop.xlane.xlu0 %774 }
  0xf8   : > { %v777_v7 = vmul.f32 0.03125, %v775_v6 }
  0xfa   : > { %v778_v8 = vsub.f32 %v2626_v4, %v777_v7 }
  0xfc   : > { %v779_v9 = vmul.f32 %v778_v8, %v778_v8 }
  0xfe   : > { %v780_v10 = vsel %vm772_vm3, %v779_v9, 0.0 }
  0xff   : > { %781 = vadd.xlane.f32.xlu0 %v780_v10 }
 0x18c   : > { %v782_v14 = vpop.xlane.xlu0 %781 }
 0x18d   : > { %v783_v15 = vmul.f32 0.032258064, %v782_v14 }
 0x18f   : > { %2166 = vrsqrt.f32 %v783_v15  ;;  %vm786_vm5 = vcmp.eq.f32.partialorder %v783_v15, inf  ;;  %v789_v18 = vand.u32 2147483648, %v783_v15  ;;  %vm788_vm6 = vcmp.eq.f32.partialorder %v783_v15, 0.0 }
 0x199   : > { %v2167_v16 = vpop.eup %2166 }
 0x19a   : > { %v785_v17 = vmul.f32 %v2167_v16, %v783_v15 }
 0x19c   : > { %v787_v19 = vsel %vm786_vm5, %v783_v15, %v785_v17 }
 0x19d   : > { %v790_v20 = vsel %vm788_vm6, %v789_v18, %v787_v19 }
 0x19e   : > { %v791_v21 = vadd.f32 1e-06, %v790_v20 }
 0x1a0   : > { %2168 = vrcp.f32 %v791_v21 }
 0x1aa   : > { %v2169_v22 = vpop.eup %2168 }
 0x1ab   : > { %v793_v24 = vmul.f32 %v2169_v22, %v778_v8 }
 0x1ad   : > { %v800_v26 = vmul.f32 %v1899_v23, %v793_v24 }
 0x1af   : > { %v807_v27 = vadd.f32 %v1900_v25, %v800_v26 }
 0x1b1   : > { %v808_v28 = vpack.c.bf16 %v807_v27, %v807_v27 }
 0x1b3   : > { %1982 = vmatmul.mubr.msk.bf16.vlgmr.msra.gmra.mrb[0].mxu0 %vm772_vm3, %v808_v28 }
 0x1b4   : > { %1993 = vmatprep.mubr.msk.bf16.mxu0 %vm2327_vm4, %v2326_v12 }
 0x286   : > { %v869_v30 = vpop.f32.mrb[0].mxu0 }
 0x287   : > { %v870_v31 = vadd.f32 %v1901_v29, %v869_v30  ;;  %v1983_v32 = vpop.f32.mrb[1].mxu0 }
 0x288   : > { %v872_v33 = vpop.f32.mrb[2].mxu0 }
 0x289   : > { %v875_v34 = vmul.f32 0.35355338, %v870_v31  ;;  %v2660_v35 = vpack.c.bf16 %v870_v31, %v870_v31  ;;  %v1984_v36 = vpop.f32.mrb[3].mxu0 }
 0x28b   : > { %v876_v37 = vpack.c.bf16 %v875_v34, %v875_v34  ;;  %885 = vrot.lane.b32.xlu1 %v2660_v35, %s2328_s25 }
 0x28d   : > { %999 = vrot.lane.b32.xlu0 %v876_v37, %s2329_s12 }
 0x28f   : > { %1001 = vrot.lane.b32.xlu1 %v2660_v35, %s2330_s13 }
 0x293   : > { %1120 = vrot.lane.b32.xlu1 %v2660_v35, %s2331_s22 }
 0x297   : > { %1118 = vrot.lane.b32.xlu1 %v876_v37, %s2332_s1  ;;  %s2914_s1 = sld [smem:[#allocation30_spill]] }
 0x29b   : > { %1239 = vrot.lane.b32.xlu1 %v2660_v35, %s2333_s15 }
 0x29d   : > { %s2915_s15 = scalar_lea.vmem %s2914_s1, %s2564_s0 }
 0x29f   : > { %1237 = vrot.lane.b32.xlu1 %v876_v37, %s2334_s11 }
 0x2fd   : > { %v886_v38 = vpop.permute.xlu1 %885 }
 0x2fe   : > { %v892_v39 = vsel %vm887_vm7, %v886_v38, 0 }
 0x2ff   : > { %1986 = vmatpush3.bf16.xpose.msra.mxu1 %v892_v39  ;;  %v1000_v43 = vpop.permute.xlu0 %999 }
 0x300   : > { %1997 = vmatprep.subr.bf16.mxu1 %v2326_v12 }
 0x301   : > { %v1002_v40 = vpop.permute.xlu1 %1001 }
 0x302   : > { %v1007_v41 = vsel %vm887_vm7, %v1002_v40, 0 }
 0x305   : > { %v1121_v42 = vpop.permute.xlu1 %1120 }
 0x306   : > { %1988 = vmatmul.mubr.msk.bf16.vlgmr.msra.gmra.mrb[0].mxu1 %vm887_vm7, %v876_v37  ;;  %v1126_v45 = vsel %vm887_vm7, %v1121_v42, 0 }
 0x307   : > { %1998 = vmatpush3.bf16.xpose.msra.mxu1 %v1007_v41  ;;  %1999 = vmatprep.mubr.msk.bf16.mxu1 %vm2327_vm4, %v2326_v12 }
 0x308   : > { %2009 = vmatprep.subr.bf16.mxu1 %v2326_v12 }
 0x309   : > { %v1119_v44 = vpop.permute.xlu1 %1118 }
 0x30d   : > { %v1240_v46 = vpop.permute.xlu1 %1239 }
 0x30e   : > { %2000 = vmatmul.mubr.msk.bf16.vlgmr.msra.gmra.mrb[4].mxu1 %vm887_vm7, %v1000_v43  ;;  %v1245_v47 = vsel %vm887_vm7, %v1240_v46, 0 }
 0x30f   : > { %2010 = vmatpush3.bf16.xpose.msra.mxu1 %v1126_v45  ;;  %2011 = vmatprep.mubr.msk.bf16.mxu1 %vm2327_vm4, %v2326_v12 }
 0x310   : > { %2021 = vmatprep.subr.bf16.mxu1 %v2326_v12 }
 0x311   : > { %v1238_v48 = vpop.permute.xlu1 %1237 }
 0x316   : > { %2012 = vmatmul.mubr.msk.bf16.vlgmr.msra.gmra.mrb[8].mxu1 %vm887_vm7, %v1119_v44 }
 0x317   : > { %2022 = vmatpush3.bf16.xpose.msra.mxu1 %v1245_v47  ;;  %2023 = vmatprep.mubr.msk.bf16.mxu1 %vm2327_vm4, %v2326_v12 }
 0x318   : > { %2033 = vmatprep.subr.bf16.mxu1 %v2326_v12 }
 0x31e   : > { %2024 = vmatmul.mubr.msk.bf16.vlgmr.msra.gmra.mrb[12].mxu1 %vm887_vm7, %v1238_v48 }
 0x31f   : > { %2037 = vmatprep.mubr.msk.bf16.mxu1 %vm2327_vm4, %v2326_v12 }
 0x3d9   : > { %v928_v50 = vpop.f32.mrb[0].mxu1 }
 0x3da   : > { %v929_v51 = vadd.f32 %v1905_v49, %v928_v50  ;;  %v1989_v52 = vpop.f32.mrb[1].mxu1 }
 0x3db   : > { %v931_v53 = vpop.f32.mrb[2].mxu1 }
 0x3dc   : > { %v1990_v54 = vpop.f32.mrb[3].mxu1  ;;  %v934_v55 = vsel %vm887_vm7, %v929_v51, -inf }
 0x3dd   : > { %935 = vmax.xlane.f32.xlu1 %v934_v55 }
 0x3e1   : > { %v1043_v56 = vpop.f32.mrb[4].mxu1 }
 0x3e2   : > { %v1044_v57 = vadd.f32 %v1905_v49, %v1043_v56  ;;  %v2001_v58 = vpop.f32.mrb[5].mxu1 }
 0x3e3   : > { %v1046_v59 = vpop.f32.mrb[6].mxu1 }
 0x3e4   : > { %v2002_v60 = vpop.f32.mrb[7].mxu1  ;;  %v1049_v61 = vsel %vm887_vm7, %v1044_v57, -inf }
 0x3e5   : > { %1050 = vmax.xlane.f32.xlu0 %v1049_v61 }
 0x3e9   : > { %v1162_v62 = vpop.f32.mrb[8].mxu1 }
 0x3ea   : > { %v1163_v63 = vadd.f32 %v1905_v49, %v1162_v62  ;;  %v2013_v0 = vpop.f32.mrb[9].mxu1 }
 0x3eb   : > { %v1165_v1 = vpop.f32.mrb[10].mxu1 }
 0x3ec   : > { %v2014_v2 = vpop.f32.mrb[11].mxu1  ;;  %v1168_v3 = vsel %vm887_vm7, %v1163_v63, -inf }
 0x3ed   : > { %1169 = vmax.xlane.f32.xlu1 %v1168_v3  ;;  %v2158_v2 = vld [vmem:[%s2582_s23] sm:$0xff]  }
 0x3ee   : > { %2034 = vmatpush3.bf16.msra.mxu1 %v2158_v2 }
 0x3ef   : > { %2035 = vmatprep.subr.bf16.mxu1 %v2326_v12 }
 0x3f1   : > { %v1281_v5 = vpop.f32.mrb[12].mxu1 }
 0x3f2   : > { %v1282_v6 = vadd.f32 %v1905_v49, %v1281_v5  ;;  %v2025_v7 = vpop.f32.mrb[13].mxu1  ;;  %v2159_v5 = vld [vmem:[%s2582_s23 + $0x8] sm:$0xff]  }
 0x3f3   : > { %v1284_v8 = vpop.f32.mrb[14].mxu1  ;;  %2036 = vmatpush3.bf16.msra.mxu1 %v2159_v5 }
 0x3f4   : > { %v2026_v9 = vpop.f32.mrb[15].mxu1  ;;  %v1287_v10 = vsel %vm887_vm7, %v1282_v6, -inf  ;;  %2049 = vmatprep.subr.bf16.mxu1 %v2326_v12 }
 0x3f5   : > { %1288 = vmax.xlane.f32.xlu0 %v1287_v10 }
 0x46a   : > { %v936_v11 = vpop.xlane.xlu1 %935 }
 0x46b   : > { %v937_v13 = vsub.f32 %v929_v51, %v936_v11 }
 0x46d   : > { %v938_v14 = vmul.f32 1.442695, %v937_v13 }
 0x46f   : > { %2170 = vpow2.f32 %v938_v14 }
 0x472   : > { %v1051_v15 = vpop.xlane.xlu0 %1050 }
 0x473   : > { %v1052_v16 = vsub.f32 %v1044_v57, %v1051_v15 }
 0x475   : > { %v1053_v17 = vmul.f32 1.442695, %v1052_v16 }
 0x477   : > { %2172 = vpow2.f32 %v1053_v17 }
 0x479   : > { %v2171_v18 = vpop.eup %2170 }
 0x47a   : > { %v940_v19 = vsel %vm887_vm7, %v2171_v18, 0.0  ;;  %v1170_v27 = vpop.xlane.xlu1 %1169 }
 0x47b   : > { %941 = vadd.xlane.f32.xlu1 %v940_v19  ;;  %v1171_v28 = vsub.f32 %v1163_v63, %v1170_v27 }
 0x47d   : > { %v1172_v29 = vmul.f32 1.442695, %v1171_v28 }
 0x481   : > { %v2173_v20 = vpop.eup %2172 }
 0x482   : > { %v1289_v21 = vpop.xlane.xlu0 %1288  ;;  %v1055_v22 = vsel %vm887_vm7, %v2173_v20, 0.0 }
 0x483   : > { %v1290_v23 = vsub.f32 %v1282_v6, %v1289_v21  ;;  %1056 = vadd.xlane.f32.xlu0 %v1055_v22  ;;  %v1920_v21 = vld [vmem:[%s2911_s29] ss:$0 sm:$0xff] }
 0x485   : > { %v1291_v24 = vmul.f32 1.442695, %v1290_v23 }
 0x487   : > { %2174 = vpow2.f32 %v1291_v24 }
 0x488   : > { %2176 = vpow2.f32 %v1172_v29 }
 0x48c   : > { %946 = vrot.lane.b32.xlu1 %v2660_v35, %s2335_s16 }
 0x491   : > { %v2175_v25 = vpop.eup %2174 }
 0x492   : > { %v1293_v26 = vsel %vm887_vm7, %v2175_v25, 0.0  ;;  %v2177_v30 = vpop.eup %2176 }
 0x493   : > { %1294 = vadd.xlane.f32.xlu0 %v1293_v26  ;;  %v1174_v31 = vsel %vm887_vm7, %v2177_v30, 0.0 }
 0x4a9   : > { %1061 = vrot.lane.b32.xlu0 %v2660_v35, %s2336_s18  ;;  %s2917_s18 = sld [smem:[#allocation36_spill]] (!%p1933_p0) }
 0x4b0   : > { %1175 = vadd.xlane.f32.xlu1 %v1174_v31 }
 0x4c1   : > { %1180 = vrot.lane.b32.xlu1 %v2660_v35, %s2337_s2 }
 0x4c5   : > { %1299 = vrot.lane.b32.xlu1 %v2660_v35, %s2338_s19 }
 0x508   : > { %v942_v32 = vpop.xlane.xlu1 %941 }
 0x509   : > { %2178 = vrcp.f32 %v942_v32 }
 0x50c   : > { %v947_v33 = vpop.permute.xlu1 %946 }
 0x50d   : > { %v953_v34 = vsel %vm951_vm8, %v947_v33, 0  ;;  %v2160_v33 = vld [vmem:[%s2591_s14] sm:$0xff]  }
 0x50e   : > { %1992 = vmatpush3.bf16.msra.mxu0 %v953_v34  ;;  %v2161_v34 = vld [vmem:[%s2591_s14 + $0x8] sm:$0xff]  }
 0x50f   : > { %2003 = vmatprep.subr.bf16.mxu0 %v2326_v12 }
 0x510   : > { %v1057_v37 = vpop.xlane.xlu0 %1056 }
 0x511   : > { %2180 = vrcp.f32 %v1057_v37 }
 0x513   : > { %v2179_v36 = vpop.eup %2178 }
 0x514   : > { %v944_v38 = vmul.f32 %v2179_v36, %v2171_v18  ;;  %v2163_v36 = vld [vmem:[%s2601_s30 + $0x8] sm:$0xff]  }
 0x516   : > { %v945_v39 = vpack.c.bf16 %v944_v38, %v944_v38 }
 0x518   : > { %1994 = vmatmul.mubr.msk.bf16.vlgmr.msra.gmra.mrb[4].mxu0 %vm887_vm7, %v945_v39 }
 0x519   : > { %2005 = vmatprep.mubr.msk.bf16.mxu0 %vm2327_vm4, %v2326_v12 }
 0x51b   : > { %v2181_v35 = vpop.eup %2180 }
 0x51c   : > { %v1059_v41 = vmul.f32 %v2181_v35, %v2173_v20 }
 0x51e   : > { %v1060_v44 = vpack.c.bf16 %v1059_v41, %v1059_v41 }
 0x520   : > { %v1295_v40 = vpop.xlane.xlu0 %1294 }
 0x524   : > { %v1062_v42 = vpop.permute.xlu0 %1061 }
 0x525   : > { %v1067_v43 = vsel %vm951_vm8, %v1062_v42, 0 }
 0x526   : > { %2004 = vmatpush3.bf16.msra.mxu0 %v1067_v43 }
 0x527   : > { %2015 = vmatprep.subr.bf16.mxu0 %v2326_v12 }
 0x529   : > { %2006 = vmatmul.mubr.msk.bf16.vlgmr.msra.gmra.mrb[8].mxu0 %vm887_vm7, %v1060_v44 }
 0x52a   : > { %2017 = vmatprep.mubr.msk.bf16.mxu0 %vm2327_vm4, %v2326_v12 }
 0x53d   : > { %v1176_v45 = vpop.xlane.xlu1 %1175 }
 0x53e   : > { %2182 = vrcp.f32 %v1176_v45  ;;  %v1921_v45 = vld [vmem:[%s751_s7] ss:$0 sm:$0xff] }
 0x53f   : > { %2184 = vrcp.f32 %v1295_v40 }
 0x541   : > { %v1181_v46 = vpop.permute.xlu1 %1180 }
 0x542   : > { %v1186_v47 = vsel %vm951_vm8, %v1181_v46, 0 }
 0x543   : > { %2016 = vmatpush3.bf16.msra.mxu0 %v1186_v47  ;;  %v1922_v47 = vld [vmem:[%s754_s27] ss:$0 sm:$0xff] }
 0x544   : > { %2027 = vmatprep.subr.bf16.mxu0 %v2326_v12 }
 0x545   : > { %v1300_v50 = vpop.permute.xlu1 %1299 }
 0x546   : > { %v1305_v53 = vsel %vm951_vm8, %v1300_v50, 0 }
 0x548   : > { %v2183_v48 = vpop.eup %2182 }
 0x549   : > { %v1178_v49 = vmul.f32 %v2183_v48, %v2177_v30  ;;  %v2185_v52 = vpop.eup %2184 }
 0x54a   : > { %v1297_v54 = vmul.f32 %v2185_v52, %v2175_v25  ;;  %v2165_v52 = vld [vmem:[%s2601_s30 + $0x18] sm:$0xff]  }
 0x54b   : > { %v1179_v51 = vpack.c.bf16 %v1178_v49, %v1178_v49 }
 0x54c   : > { %v1298_v55 = vpack.c.bf16 %v1297_v54, %v1297_v54 }
 0x54d   : > { %2018 = vmatmul.mubr.msk.bf16.vlgmr.msra.gmra.mrb[12].mxu0 %vm887_vm7, %v1179_v51  ;;  %v2164_v51 = vld [vmem:[%s2601_s30 + $0x10] sm:$0xff]  }
 0x54e   : > { %2028 = vmatpush3.bf16.msra.mxu0 %v1305_v53  ;;  %2029 = vmatprep.mubr.msk.bf16.mxu0 %vm2327_vm4, %v2326_v12  ;;  %v1923_v53 = vld [vmem:[%s2915_s15] ss:$0 sm:$0xff] }
 0x54f   : > { %2041 = vmatprep.subr.bf16.mxu0 %v2326_v12 }
 0x555   : > { %2030 = vmatmul.mubr.msk.bf16.vlgmr.msra.gmra.mrb[16].mxu0 %vm887_vm7, %v1298_v55 }
 0x556   : > { %2045 = vmatprep.mubr.msk.bf16.mxu0 %vm2327_vm4, %v2326_v12  ;;  %2042 = vmatpush3.bf16.msra.mxu0 %v2160_v33 }
 0x557   : > { %2043 = vmatprep.subr.bf16.mxu0 %v2326_v12 }
 0x55a   : > { %2044 = vmatpush3.bf16.msra.mxu0 %v2161_v34 }
 0x5eb   : > { %v989_v56 = vpop.f32.mrb[4].mxu0 }
 0x5ec   : > { %v995_v57 = vpack.c.bf16 %v989_v56, %v989_v56  ;;  %v1995_v58 = vpop.f32.mrb[5].mxu0 }
 0x5ed   : > { %v992_v59 = vpop.f32.mrb[6].mxu0 }
 0x5ee   : > { %997 = vst.msk [vmem:[#allocation3] sm:$0xf] %vm996_vm9, %v995_v57  ;;  %v1996_v60 = vpop.f32.mrb[7].mxu0 }
 0x5fc   : > { %v1103_v61 = vpop.f32.mrb[8].mxu0 }
 0x5fd   : > { %v1944_v62 = vpack.c.bf16 %v1103_v61, %v1103_v61  ;;  %v2007_v63 = vpop.f32.mrb[9].mxu0 }
 0x5fe   : > { %v1106_v0 = vpop.f32.mrb[10].mxu0 }
 0x5ff   : > { %1113 = vrot.lane.b32.xlu0 %v1944_v62, %s2339_s4  ;;  %v2008_v1 = vpop.f32.mrb[11].mxu0 }
 0x620   : > { %v1222_v3 = vpop.f32.mrb[12].mxu0 }
 0x621   : > { %v1945_v6 = vpack.c.bf16 %v1222_v3, %v1222_v3  ;;  %v2019_v7 = vpop.f32.mrb[13].mxu0 }
 0x622   : > { %v1225_v8 = vpop.f32.mrb[14].mxu0 }
 0x623   : > { %1232 = vrot.lane.b32.xlu1 %v1945_v6, %s2340_s5  ;;  %v2020_v9 = vpop.f32.mrb[15].mxu0 }
 0x628   : > { %v1341_v10 = vpop.f32.mrb[16].mxu0 }
 0x629   : > { %v1946_v11 = vpack.c.bf16 %v1341_v10, %v1341_v10  ;;  %v2031_v13 = vpop.f32.mrb[17].mxu0 }
 0x62a   : > { %v1344_v14 = vpop.f32.mrb[18].mxu0 }
 0x62b   : > { %1351 = vrot.lane.b32.xlu0 %v1946_v11, %s2341_s6  ;;  %v2032_v15 = vpop.f32.mrb[19].mxu0 }
 0x671   : > { %v1114_v16 = vpop.permute.xlu0 %1113 }
 0x672   : > { %1117 = vst.msk [vmem:[#allocation3] sm:$0xf] %vm1116_vm10, %v1114_v16 }
 0x695   : > { %v1233_v17 = vpop.permute.xlu1 %1232 }
 0x696   : > { %1236 = vst.msk [vmem:[#allocation3] sm:$0xf] %vm1235_vm11, %v1233_v17 }
 0x69d   : > { %v1352_v18 = vpop.permute.xlu0 %1351 }
 0x69e   : > { %1355 = vst.msk [vmem:[#allocation3] sm:$0xf] %vm1354_vm12, %v1352_v18 }
 0x6a5   : > { %v1356_v19 = vld [vmem:[#allocation3] sm:$0xf] }
 0x6a6   : > { %2038 = vmatmul.mubr.msk.bf16.vlgmr.msra.gmra.mrb[16].mxu1 %vm772_vm3, %v1356_v19 }
 0x6a7   : > { %2057 = vmatprep.mubr.msk.bf16.mxu1 %vm2327_vm4, %v2326_v12 }
 0x779   : > { %v1410_v20 = vpop.f32.mrb[16].mxu1 }
 0x77a   : > { %v1416_v22 = vadd.f32 %v1410_v20, %v2626_v4  ;;  %v2039_v23 = vpop.f32.mrb[17].mxu1  ;;  %v2162_v4 = vld [vmem:[%s2601_s30] sm:$0xff]   ;;  %s2916_s30 = sld [smem:[#allocation35_spill]] (!%p1933_p0) }
 0x77b   : > { %v1413_v24 = vpop.f32.mrb[18].mxu1  ;;  %2050 = vmatpush3.bf16.msra.mxu1 %v2162_v4 }
 0x77c   : > { %v1424_v25 = vadd.f32 %v1920_v21, %v1416_v22  ;;  %v2040_v26 = vpop.f32.mrb[19].mxu1  ;;  %2051 = vmatprep.subr.bf16.mxu1 %v2326_v12  ;;  %v1935_v22 = vld [vmem:[%s2917_s18] ss:$0 sm:$0xff] (!%p1933_p0) }
 0x77e   : > { %v1427_v27 = vsel %vm772_vm3, %v1424_v25, 0.0 }
 0x77f   : > { %1428 = vadd.xlane.f32.xlu1 %v1427_v27  ;;  %2052 = vmatpush3.bf16.msra.mxu1 %v2163_v36 }
 0x780   : > { %2053 = vmatprep.subr.bf16.mxu1 %v2326_v12  ;;  %v1934_v20 = vld [vmem:[%s2916_s30] ss:$0 sm:$0xff] (!%p1933_p0) }
 0x783   : > { %2054 = vmatpush3.bf16.msra.mxu1 %v2164_v51 }
 0x784   : > { %2055 = vmatprep.subr.bf16.mxu1 %v2326_v12  ;;  %v1932_v12 = vld [vmem:[%s742_s21] ss:$0 sm:$0xff] }
 0x787   : > { %2056 = vmatpush3.bf16.msra.mxu1 %v2165_v52 }
 0x80c   : > { %v1429_v28 = vpop.xlane.xlu1 %1428 }
 0x80d   : > { %v1430_v29 = vmul.f32 0.03125, %v1429_v28 }
 0x80f   : > { %v1431_v30 = vsub.f32 %v1424_v25, %v1430_v29 }
 0x811   : > { %v1432_v31 = vmul.f32 %v1431_v30, %v1431_v30 }
 0x813   : > { %v1433_v32 = vsel %vm772_vm3, %v1432_v31, 0.0 }
 0x814   : > { %1434 = vadd.xlane.f32.xlu0 %v1433_v32 }
 0x8a1   : > { %v1435_v37 = vpop.xlane.xlu0 %1434 }
 0x8a2   : > { %v1436_v38 = vmul.f32 0.032258064, %v1435_v37 }
 0x8a4   : > { %2186 = vrsqrt.f32 %v1436_v38  ;;  %vm1439_vm13 = vcmp.eq.f32.partialorder %v1436_v38, inf  ;;  %v1442_v40 = vand.u32 2147483648, %v1436_v38  ;;  %vm1441_vm14 = vcmp.eq.f32.partialorder %v1436_v38, 0.0 }
 0x8ae   : > { %v2187_v39 = vpop.eup %2186 }
 0x8af   : > { %v1438_v35 = vmul.f32 %v2187_v39, %v1436_v38 }
 0x8b1   : > { %v1440_v41 = vsel %vm1439_vm13, %v1436_v38, %v1438_v35 }
 0x8b2   : > { %v1443_v42 = vsel %vm1441_vm14, %v1442_v40, %v1440_v41 }
 0x8b3   : > { %v1444_v43 = vadd.f32 1e-06, %v1443_v42 }
 0x8b5   : > { %2188 = vrcp.f32 %v1444_v43 }
 0x8bf   : > { %v2189_v44 = vpop.eup %2188 }
 0x8c0   : > { %v1446_v46 = vmul.f32 %v2189_v44, %v1431_v30 }
 0x8c2   : > { %v1453_v48 = vmul.f32 %v1921_v45, %v1446_v46 }
 0x8c4   : > { %v1460_v49 = vadd.f32 %v1922_v47, %v1453_v48 }
 0x8c6   : > { %v1461_v50 = vpack.c.bf16 %v1460_v49, %v1460_v49 }
 0x8c8   : > { %2046 = vmatmul.mubr.msk.bf16.vlgmr.msra.gmra.mrb[20].mxu0 %vm772_vm3, %v1461_v50 }
 0x99b   : > { %v1522_v54 = vpop.f32.mrb[20].mxu0 }
 0x99c   : > { %v1523_v55 = vadd.f32 %v1923_v53, %v1522_v54  ;;  %v2047_v56 = vpop.f32.mrb[21].mxu0 }
 0x99d   : > { %v1525_v57 = vpop.f32.mrb[22].mxu0 }
 0x99e   : > { %v1528_v58 = vmax.f32 %v1523_v55, 0.0  ;;  %v2048_v59 = vpop.f32.mrb[23].mxu0 }
 0x9a0   : > { %v1529_v60 = vpack.c.bf16 %v1528_v58, %v1528_v58 }
 0x9a2   : > { %2058 = vmatmul.mubr.msk.bf16.vlgmr.msra.gmra.mrb[20].mxu1 %vm1562_vm15, %v1529_v60 }
 0xa74   : > { %1619 = sbr.rel (%p1933_p0) target bundleno = 3011 (0xbc3), region = 96 }
 0xa75   : > { %v1600_v61 = vpop.f32.mrb[20].mxu1 }
 0xa76   : > { %v1606_v62 = vadd.f32 %v1600_v61, %v1424_v25  ;;  %v2059_v63 = vpop.f32.mrb[21].mxu1 }
 0xa77   : > { %v1603_v0 = vpop.f32.mrb[22].mxu1 }
 0xa78   : > { %v1614_v1 = vadd.f32 %v1932_v12, %v1606_v62  ;;  %v2060_v2 = vpop.f32.mrb[23].mxu1 }
 0xa7a   : > { %1615 = vst.msk [vmem:[#allocation2] sm:$0xff] %vm772_vm3, %v1614_v1  ;;  %v1622_v3 = vsel (!%p1933_p0), %vm772_vm3, %v1614_v1, 0.0 }
 0xa7b   : > { %1623 = vadd.xlane.f32.xlu0 %v1622_v3 }
 0xb08   : > { %v1624_v5 = vpop.xlane.xlu0 %1623 }
 0xb09   : > { %v1625_v6 = vmul.f32 0.03125, %v1624_v5 }
 0xb0b   : > { %v1626_v7 = vsub.f32 %v1614_v1, %v1625_v6 }
 0xb0d   : > { %v1627_v8 = vmul.f32 %v1626_v7, %v1626_v7 }
 0xb0f   : > { %v1628_v9 = vsel %vm772_vm3, %v1627_v8, 0.0 }
 0xb10   : > { %1629 = vadd.xlane.f32.xlu0 %v1628_v9 }
 0xb9d   : > { %v1630_v10 = vpop.xlane.xlu0 %1629 }
 0xb9e   : > { %v1631_v11 = vmul.f32 0.032258064, %v1630_v10 }
 0xba0   : > { %2190 = vrsqrt.f32 %v1631_v11  ;;  %vm1634_vm0 = vcmp.eq.f32.partialorder %v1631_v11, inf  ;;  %v1637_v15 = vand.u32 2147483648, %v1631_v11  ;;  %vm1636_vm1 = vcmp.eq.f32.partialorder %v1631_v11, 0.0 }
 0xbaa   : > { %v2191_v13 = vpop.eup %2190 }
 0xbab   : > { %v1633_v14 = vmul.f32 %v2191_v13, %v1631_v11 }
 0xbad   : > { %v1635_v16 = vsel %vm1634_vm0, %v1631_v11, %v1633_v14 }
 0xbae   : > { %v1638_v17 = vsel %vm1636_vm1, %v1637_v15, %v1635_v16 }
 0xbaf   : > { %v1639_v18 = vadd.f32 1e-06, %v1638_v17 }
 0xbb1   : > { %2192 = vrcp.f32 %v1639_v18 }
 0xbbb   : > { %v2193_v19 = vpop.eup %2192 }
 0xbbc   : > { %v1641_v21 = vmul.f32 %v2193_v19, %v1626_v7 }
 0xbbe   : > { %v1648_v23 = vmul.f32 %v1934_v20, %v1641_v21 }
 0xbc0   : > { %v1655_v24 = vadd.f32 %v1935_v22, %v1648_v23 }
 0xbc2   : > { %1656 = vst.msk [vmem:[%s2623_s8] sm:$0xff] %vm772_vm3, %v1655_v24 }
 0xbc3 PF: > { %s2918_s2 = sld [smem:[#allocation14_spill]]  ;;  %s2919_s19 = sld [smem:[#allocation23_spill]] }
 0xbc4   : > { %s2920_s4 = sld [smem:[#allocation20_spill]]  ;;  %s2921_s28 = sld [smem:[#allocation37_spill]] }
 0xbc5   : > { %s1671_s14 = sshll.u32 %s2623_s8, 4  ;;  %s2342_s25 = smov [#allocation8]   ;;  %s1672_s14 = int_to_ptr.vmem [resolvable:$true] %s1671_s14 }
 0xbc6   : > { %s2224_s26 = scalar_lea.vmem %s1672_s14, 128  ;;  %s2228_s12 = sshll.u32 %s2342_s25, 4  ;;  %s2229_s12 = int_to_ptr.vmem [resolvable:$false] %s2228_s12 }
 0xbc7   : > { %p2225_p7 = scmp.ne.s32.totalorder %s1672_s14, %s2224_s26  ;;  %s2230_s13 = scalar_lea.vmem %s2229_s12, 256 }
 0xbc8   : > { %p2231_p3 = scmp.lt.s32.totalorder %s1672_s14, %s2229_s12  ;;  %p2232_p8 = scmp.lt.s32.totalorder %s2230_s13, %s2224_s26 }
 0xbc9   : > { %s1937_s5 = sshll.u32 %s2918_s2, 7  ;;  %s1658_s20 = scalar_lea.sflag [#allocation7], %s2919_s19 }
 0xbca   : > { %s2922_s17 = smov %s2921_s28  ;;  %s2780_s29 = scalar_lea.hbm %s2921_s28, %s1937_s5 }
 0xbcb   : > { %p2923_p13 = scmp.ne.s32.totalorder %s2920_s4, 0  ;;  %p2233_p12 = por %p2232_p8, %p2231_p3 }
 0xbcd   : > { %p2226_p4 = pnand %p2225_p7, %p2923_p13 }
 0xbcf   : > { %p2227_p6 = pneg %p2226_p4 }
 0xbd1   : > { %p2234_p1 = pnand %p2233_p12, %p2227_p6 }
 0xbd3   : > { %2237 = shalt.err (!%p2234_p1)
}
 0xbd4   : > { %s2238_s8 = scalar_lea.hbm %s2780_s29, 128  ;;  %s2242_s1 = scalar_lea.hbm %s2922_s17, 256 }
 0xbd5   : > { %p2239_p2 = scmp.ne.s32.totalorder %s2780_s29, %s2238_s8  ;;  %p2243_p11 = scmp.lt.u32.totalorder %s2780_s29, %s2922_s17 }
 0xbd6   : > { %p2244_p9 = scmp.lt.u32.totalorder %s2242_s1, %s2238_s8  ;;  %p2246_p7 = scmp.lt.u32.totalorder %s2238_s8, %s2780_s29 }
 0xbd7   : > { %p2240_p5 = pnand %p2239_p2, %p2923_p13 }
 0xbd8   : > { %p2245_p0 = por %p2244_p9, %p2243_p11 }
 0xbd9   : > { %p2241_p10 = pneg %p2240_p5 }
 0xbda   : > { %p2247_p4 = por %p2246_p7, %p2245_p0 }
 0xbdc   : > { %p2248_p6 = pnand %p2247_p4, %p2241_p10 }
 0xbde   : > { %2251 = shalt.err (!%p2248_p6)
}
 0xbdf   : > { %2063 = dma.vmem_to_hbm [thread:$0]  (%p2923_p13), %s1672_s14, 128, %s2780_s29, %s1658_s20  }
 0xbe0 PF: > { %s2924_s11 = sld [smem:[#allocation17_spill]]  ;;  %s2925_s24 = sld [smem:[#allocation11_spill]] }
 0xbe1   : > { %s2926_s0 = sld [smem:[#allocation21_spill]] }
 0xbe6   : > { %p2074_p3 = scmp.ge.s32.totalorder %s2924_s11, 2  ;;  %s1683_s30 = sand.u32 1, %s2925_s24  }
 0xbe7   : > { %p2927_p8 = scmp.ne.s32.totalorder %s2926_s0, 0  ;;  %s1684_s21 = scalar_lea.sflag [#allocation7], %s1683_s30 }
 0xbe9   : > { %p2070_p12 = pnand %p2074_p3, %p2927_p8 }
 0xbeb   : > { %2289 = dma.done.wait (!%p2070_p12), %s1684_s21, 128  }
 0xbec   : > { %2291 = vsyncadd (!%p2070_p12), %s1684_s21, 4294967168  ;;  %s32_s28 = sadd.s32 1, %s2924_s11   ;;  %s2928_s21 = sld [smem:[#allocation12_spill]] }
 0xbed   : > { %p29_p1 = scmp.ge.s32.totalorder %s32_s28, 6   ;;  %s2929_s22 = sld [smem:[#allocation13_spill]] }
 0xbee   : > { %s2930_s23 = sld [smem:[#allocation22_spill]]  ;;  %s2931_s24 = sld [smem:[#allocation15_spill]] }
 0xbef   : > { %s2932_s25 = sld [smem:[#allocation16_spill]]  ;;  %s2933_s26 = sld [smem:[#allocation18_spill]] }
 0xbf0   : > { %s2934_s27 = sld [smem:[#allocation19_spill]]  ;;  %31 = sbr.rel (!%p29_p1) target bundleno = 22 (0x16), region = 176 }
 0xbf7   :  { %1689 = vsyncpa [#allocation6], 1 }
 0xbf8   :  { %1691 = vsyncpa [#allocation6 + $0x1], 1 }
 0xbf9   :  { %1692 = vsyncpa [#allocation7], 1 }
 0xbfa   :  { %1694 = vsyncpa [#allocation7 + $0x1], 1 }

</bundles_post_ra>
